<compile_context>
chip_gen: v5e
topology: v5e:2x2
jax: 0.10.0
libtpu: 0.0.40
codegen_flags: <defaults>
</compile_context>

<pallas_src>
import math

import jax
import jax.numpy as jnp
from jax import lax
from jax.experimental import pallas as pl
from jax.experimental.pallas import tpu as pltpu


def _round_up(x, m):
    return (x + m - 1) // m * m


def _vmem_capacity_bytes():
    """Physical VMEM per core (generation-aware) with a conservative fallback."""
    try:
        cap = getattr(pltpu.get_tpu_info(), "vmem_capacity_bytes", None)
        if cap:
            return int(cap)
    except Exception:
        pass
    return 64 * 1024 * 1024          # assume v7x-sized VMEM if query unavailable


def _make_kernel(S, TILE_M, C_pad, num_s_tiles, need_row_mask):
    """Fused gated-conv + adaptive-max-pool + classifier-head kernel body."""
    rows_last = S - (num_s_tiles - 1) * TILE_M   # valid rows in the final s tile (static)

    def kernel(win_ref, wf_ref, bf_ref, w3_ref, b3_ref, w4_ref, b4_ref,
               out_ref, acc_ref):
        # win_ref : (1, TILE_M, KE)   compute dtype -- im2col rows for batch b
        # wf_ref  : (KE, 2*C_pad)     compute dtype -- both Conv1d weights fused
        # bf_ref  : (1, 2*C_pad)      f32           -- fused conv biases
        # w3/b3, w4/b4 : classifier head (f32, dims padded to 128; pad rows are 0)
        # out_ref : (1, 1, NL_pad)    f32           -- logits for batch b
        # acc_ref : (8, C_pad)        f32 scratch   -- sublane-partial running max
        s = pl.program_id(1)
        last = pl.num_programs(1) - 1

        # ---- init running max-pool accumulator on the first row tile ----
        @pl.when(s == 0)
        def _():
            acc_ref[...] = jnp.full_like(acc_ref, -jnp.inf)

        # ---- fused gated conv: ONE (TILE_M, KE) x (KE, 2*C_pad) MXU matmul ----
        y = jnp.dot(win_ref[0], wf_ref[...],
                    preferred_element_type=jnp.float32) + bf_ref[...]
        gated = y[:, :C_pad] * jax.nn.sigmoid(y[:, C_pad:])        # f32 epilogue

        def accumulate(g):
            # Elementwise (VALU-slot) running max: fold TILE_M rows into 8
            # sublane partials; the lone cross-sublane (XLU) reduce happens
            # once, in the head epilogue.
            part = jnp.max(g.reshape(TILE_M // 8, 8, C_pad), axis=0)
            acc_ref[...] = jnp.maximum(acc_ref[...], part)

        if need_row_mask:
            # Only the final s tile contains out-of-range (garbage) rows --
            # pay the iota/compare/select only there.
            @pl.when(s != last)
            def _():
                accumulate(gated)

            @pl.when(s == last)
            def _():
                row = lax.broadcasted_iota(jnp.int32, (TILE_M, C_pad), 0)
                accumulate(jnp.where(row < rows_last, gated, -jnp.inf))
        else:
            accumulate(gated)

        # ---- classifier head fused into the last row tile ----
        @pl.when(s == last)
        def _():
            # NOTE: padded channels (C..C_pad) hold 0, not the true max; this is
            # only safe because the corresponding w3 rows are zero -- never
            # export `h` directly.
            h = jnp.max(acc_ref[...], axis=0, keepdims=True)        # (1, C_pad)
            z = jnp.dot(h, w3_ref[...], preferred_element_type=jnp.float32) + b3_ref[...]
            z = jnp.maximum(z, 0.0)
            logits = jnp.dot(z, w4_ref[...], preferred_element_type=jnp.float32) + b4_ref[...]
            out_ref[...] = logits.reshape(1, 1, -1)

    return kernel


def malconv_clf_forward(input_ids, emb_table, w1, b1, w2, b2, w3, b3, w4, b4, *,
                        kernel_size, stride, compute_dtype=jnp.bfloat16,
                        tile_m=None):
    """Pallas-backed MalConvForSequenceClassification forward.

    input_ids : (B, L) int32
    emb_table : (vocab, E) f32   (pad_token row already zeroed)
    w1, w2    : (C, E, K) f32    (PyTorch Conv1d weight layout), b1/b2: (C,)
    w3        : (C, H)  f32, b3: (H,)      -- clf_head Linear 1
    w4        : (H, NL) f32, b4: (NL,)     -- clf_head Linear 2
    returns   : (B, NL) f32 logits
    """
    B, L = input_ids.shape
    E = emb_table.shape[1]
    C = w1.shape[0]
    K = kernel_size
    H = w3.shape[1]
    NL = w4.shape[1]
    S = (L - K) // stride + 1
    KE = K * E

    # lane-dense padded channel/hidden sizes (padded cols are nulled by zero
    # weight rows and sliced off at the end)
    C_pad = _round_up(C, 128)
    H_pad = _round_up(H, 128)
    NL_pad = _round_up(NL, 128)

    itemsize = jnp.dtype(compute_dtype).itemsize

    # ---- generation-aware VMEM budget -> row tile size ----
    vmem_cap = _vmem_capacity_bytes()
    vmem_limit = min(max(vmem_cap * 3 // 4, 32 << 20), 100 << 20)
    KE_lane = _round_up(KE, 128)                      # in-VMEM lane padding of a window row
    wf_bytes = _round_up(KE, 16) * (2 * C_pad) * itemsize              # single-buffered
    head_bytes = (C_pad * H_pad + H_pad * NL_pad + 2 * C_pad + H_pad + NL_pad) * 4
    misc_bytes = head_bytes + 8 * C_pad * 4 + 2 * NL_pad * 4 + (4 << 20)
    if tile_m is None:
        budget = vmem_limit - wf_bytes - misc_bytes
        tile_m = max(budget // (2 * KE_lane * itemsize), 16)  # 2 = double-buffered window DMA
    TILE_M = max(16, (int(min(tile_m, 4096)) // 16) * 16)     # 16: bf16-safe sublane packing
    if S >= 16:
        TILE_M = min(TILE_M, (S // 16) * 16)                  # never exceed the array extent
    num_s_tiles = -(-S // TILE_M)
    need_row_mask = (S % TILE_M) != 0

    # ---- glue: embedding lookup + window view (plain JAX, no padded copy) ----
    # TODO(synk): the embedding table is tiny (~8 KiB for 257x8); keeping it
    # VMEM-resident and gathering in-kernel would cut HBM reads by ~E x.
    emb = emb_table[input_ids].astype(compute_dtype)           # (B, L, E)
    if stride == K:
        # canonical MalConv: im2col is a pure reshape, zero data duplication.
        span = emb if L == S * K else emb[:, :S * K, :]
        win = span.reshape(B, S, KE)
    else:
        # TODO(synk): stride < K duplicates each embedded byte K/stride times;
        # express as K/stride shifted sub-matmuls over (B, L, E) blocks to cut
        # HBM traffic on overlapping-window configs.
        idx = jnp.arange(S)[:, None] * stride + jnp.arange(K)[None, :]   # (S, K)
        win = emb[:, idx, :].reshape(B, S, KE)
    if win.shape[1] < TILE_M:                         # degenerate S < 16 only
        win = jnp.pad(win, ((0, 0), (0, TILE_M - win.shape[1]), (0, 0)))

    # ---- fused conv weights: flat index k*E + e matches window flattening ----
    def flat_w(w):                                    # (C, E, K) -> (K*E, C)
        return jnp.transpose(w, (2, 1, 0)).reshape(KE, C)

    # TODO(synk): production MalConv (K*E ~ 131072) also needs the K*E
    # reduction dim tiled (third grid axis + f32 conv accumulator before the
    # gating); at the sizes handled here the fused weight stays VMEM-resident.
    w1f = jnp.pad(flat_w(w1), ((0, 0), (0, C_pad - C)))
    w2f = jnp.pad(flat_w(w2), ((0, 0), (0, C_pad - C)))
    wf = jnp.concatenate([w1f, w2f], axis=1).astype(compute_dtype)      # (KE, 2*C_pad)
    bf = jnp.concatenate([jnp.pad(b1, (0, C_pad - C)),
                          jnp.pad(b2, (0, C_pad - C))]).reshape(1, 2 * C_pad)
    bf = bf.astype(jnp.float32)

    # ---- classifier head weights (tiny; kept f32) ----
    w3p = jnp.pad(w3, ((0, C_pad - C), (0, H_pad - H))).astype(jnp.float32)
    b3p = jnp.pad(b3, (0, H_pad - H)).reshape(1, H_pad).astype(jnp.float32)
    w4p = jnp.pad(w4, ((0, H_pad - H), (0, NL_pad - NL))).astype(jnp.float32)
    b4p = jnp.pad(b4, (0, NL_pad - NL)).reshape(1, NL_pad).astype(jnp.float32)

    kernel = _make_kernel(S, TILE_M, C_pad, num_s_tiles, need_row_mask)

    win_spec = pl.BlockSpec((1, TILE_M, KE), lambda b, s: (b, s, 0))
    const_shapes = [(KE, 2 * C_pad), (1, 2 * C_pad), (C_pad, H_pad),
                    (1, H_pad), (H_pad, NL_pad), (1, NL_pad)]

    def _build(const_kw):
        return pl.pallas_call(
            kernel,
            out_shape=jax.ShapeDtypeStruct((B, 1, NL_pad), jnp.float32),
            grid=(B, num_s_tiles),
            in_specs=[win_spec] + [pl.BlockSpec(shp, lambda b, s: (0, 0), **const_kw)
                                   for shp in const_shapes],
            out_specs=pl.BlockSpec((1, 1, NL_pad), lambda b, s: (b, 0, 0)),
            scratch_shapes=[pltpu.VMEM((8, C_pad), jnp.float32)],
            compiler_params=pltpu.CompilerParams(
                # TODO(synk): on v7x with B < 2, split the s axis across the two
                # TensorCores (leading size-2 parallel axis + per-core partial
                # max with a tiny combine epilogue) instead of batch parallelism.
                dimension_semantics=("parallel", "arbitrary"),
                vmem_limit_bytes=int(vmem_limit)),
        )

    args = (win, wf, bf, w3p, b3p, w4p, b4p)
    try:
        # Grid-invariant operands are single-buffered: their index_map is
        # constant, so double-buffering them only wastes VMEM (wf is the big one).
        out = _build(dict(pipeline_mode=pl.Buffered(1)))(*args)
    except Exception:
        # Fallback for JAX versions without per-BlockSpec pipeline_mode.
        out = _build({})(*args)

    return out[:, 0, :NL]


def malconv_clf_reference(input_ids, emb_table, w1, b1, w2, b2, w3, b3, w4, b4, *,
                          kernel_size, stride):
    """Pure-JAX reference mirroring the PyTorch forward exactly (f32)."""
    emb = emb_table[input_ids].astype(jnp.float32).transpose(0, 2, 1)    # (B, E, L)

    def conv1d(x, w, b):
        out = lax.conv_general_dilated(
            x, w, window_strides=(stride,), padding="VALID",
            dimension_numbers=("NCH", "OIH", "NCH"))
        return out + b[None, :, None]

    gated = conv1d(emb, w1, b1) * jax.nn.sigmoid(conv1d(emb, w2, b2))    # (B, C, S)
    hidden = jnp.max(gated, axis=-1)                                     # (B, C)
    z = jnp.maximum(hidden @ w3 + b3, 0.0)
    return z @ w4 + b4                                                   # (B, NL)


def _build_params(key, vocab, E, C, K, H, NL, pad_token_id=0):
    ks = jax.random.split(key, 9)
    emb_table = jax.random.normal(ks[0], (vocab, E), jnp.float32)
    emb_table = emb_table.at[pad_token_id].set(0.0)       # nn.Embedding padding_idx
    bc = 1.0 / math.sqrt(E * K)                           # Conv1d init bound
    w1 = jax.random.uniform(ks[1], (C, E, K), jnp.float32, -bc, bc)
    b1 = jax.random.uniform(ks[2], (C,), jnp.float32, -bc, bc)
    w2 = jax.random.uniform(ks[3], (C, E, K), jnp.float32, -bc, bc)
    b2 = jax.random.uniform(ks[4], (C,), jnp.float32, -bc, bc)
    b3b = 1.0 / math.sqrt(C)
    w3 = jax.random.uniform(ks[5], (C, H), jnp.float32, -b3b, b3b)
    b3 = jax.random.uniform(ks[6], (H,), jnp.float32, -b3b, b3b)
    b4b = 1.0 / math.sqrt(H)
    w4 = jax.random.uniform(ks[7], (H, NL), jnp.float32, -b4b, b4b)
    b4 = jax.random.uniform(ks[8], (NL,), jnp.float32, -b4b, b4b)
    return emb_table, w1, b1, w2, b2, w3, b3, w4, b4


def _run_case(name, key, *, vocab, E, C, K, stride, H, NL, B, L,
              compute_dtype, tile_m, atol, rtol):
    kp, ki = jax.random.split(key)
    params = _build_params(kp, vocab, E, C, K, H, NL)
    input_ids = jax.random.randint(ki, (B, L), 0, vocab, jnp.int32)

    out = malconv_clf_forward(input_ids, *params, kernel_size=K, stride=stride,
                              compute_dtype=compute_dtype, tile_m=tile_m)
    out = jax.block_until_ready(out)
    ref = malconv_clf_reference(input_ids, *params, kernel_size=K, stride=stride)
    ref = jax.block_until_ready(ref)
    assert out.shape == (B, NL), (name, out.shape)
    if not jnp.allclose(out, ref, atol=atol, rtol=rtol):
        raise AssertionError(
            f"{name}: mismatch, max abs err = {jnp.max(jnp.abs(out - ref))}")


if __name__ == "__main__":
    root = jax.random.PRNGKey(0)
    k1, k2, k3, k4 = jax.random.split(root, 4)

    # overlapping windows (stride < kernel_size), f32, auto tile + row masking
    _run_case("overlap_f32", k1, vocab=32, E=8, C=16, K=4, stride=2, H=16, NL=4,
              B=2, L=68, compute_dtype=jnp.float32, tile_m=None, atol=1e-4, rtol=1e-4)

    # canonical MalConv layout (stride == kernel_size), default bf16 matmul
    # (f32 accumulate/epilogue), auto tile.  bf16 inputs diverge from the f32
    # PyTorch reference at the ~1e-2 level -- covered by the loose tolerance.
    _run_case("canonical_bf16", k2, vocab=64, E=8, C=24, K=8, stride=8, H=32, NL=5,
              B=3, L=144, compute_dtype=jnp.bfloat16, tile_m=None, atol=0.1, rtol=0.1)

    # canonical, f32, small tile_m override PURELY to exercise the multi-tile
    # running-max accumulator + last-tile row-mask path at demo scale
    # (production tiles are auto-sized from VMEM to >= 256 rows).
    _run_case("canonical_f32_multitile", k3, vocab=64, E=8, C=24, K=8, stride=8,
              H=32, NL=5, B=2, L=560, compute_dtype=jnp.float32, tile_m=32,
              atol=1e-4, rtol=1e-4)

    # exact-divide path (no row mask), multi-tile, f32
    _run_case("canonical_f32_exact", k4, vocab=64, E=8, C=24, K=8, stride=8,
              H=32, NL=5, B=2, L=512, compute_dtype=jnp.float32, tile_m=32,
              atol=1e-4, rtol=1e-4)

    print("KERNEL_OK")
</pallas_src>

<mosaic_0001>
module attributes {stable_mosaic.version = 11 : i64} {
  func.func @kernel(%arg0: i32, %arg1: i32, %arg2: memref<1x32x32xf32, #tpu.memory_space<vmem>>, %arg3: memref<32x256xf32, #tpu.memory_space<vmem>>, %arg4: memref<1x256xf32, #tpu.memory_space<vmem>>, %arg5: memref<128x128xf32, #tpu.memory_space<vmem>>, %arg6: memref<1x128xf32, #tpu.memory_space<vmem>>, %arg7: memref<128x128xf32, #tpu.memory_space<vmem>>, %arg8: memref<1x128xf32, #tpu.memory_space<vmem>>, %arg9: memref<1x1x128xf32, #tpu.memory_space<vmem>>, %arg10: memref<8x128xf32, #tpu.memory_space<vmem>>) attributes {dimension_semantics = [#tpu.dimension_semantics<parallel>, #tpu.dimension_semantics<arbitrary>], iteration_bounds = array<i64: 2, 2>, scalar_prefetch = 0 : i64, scratch_operands = 1 : i64, tpu.core_type = #tpu.core_type<tc>, window_params = [{transform_indices = @transform_0, window_bounds = array<i64: 1, 32, 32>}, {pipeline_mode = #tpu.pipeline_mode<synchronous>, transform_indices = @transform_1, window_bounds = array<i64: 32, 256>}, {pipeline_mode = #tpu.pipeline_mode<synchronous>, transform_indices = @transform_2, window_bounds = array<i64: 1, 256>}, {pipeline_mode = #tpu.pipeline_mode<synchronous>, transform_indices = @transform_3, window_bounds = array<i64: 128, 128>}, {pipeline_mode = #tpu.pipeline_mode<synchronous>, transform_indices = @transform_4, window_bounds = array<i64: 1, 128>}, {pipeline_mode = #tpu.pipeline_mode<synchronous>, transform_indices = @transform_5, window_bounds = array<i64: 128, 128>}, {pipeline_mode = #tpu.pipeline_mode<synchronous>, transform_indices = @transform_6, window_bounds = array<i64: 1, 128>}, {transform_indices = @transform_7, window_bounds = array<i64: 1, 1, 128>}]} {
    %c0_i32 = arith.constant 0 : i32
    %0 = arith.cmpi eq, %arg1, %c0_i32 : i32
    %1 = arith.extui %0 : i1 to i32
    %c0_i32_0 = arith.constant 0 : i32
    %2 = arith.cmpi ne, %1, %c0_i32_0 : i32
    scf.if %2 {
      %cst_13 = arith.constant 0xFF800000 : f32
      %27 = vector.broadcast %cst_13 : f32 to vector<8x128xf32>
      %c0_14 = arith.constant 0 : index
      %c0_15 = arith.constant 0 : index
      %28 = vector.load %arg10[%c0_14, %c0_15] : memref<8x128xf32, #tpu.memory_space<vmem>>, vector<8x128xf32>
      tpu.vector_store %arg10[%c0_14, %c0_15], %27 {strides = array<i32>} : memref<8x128xf32, #tpu.memory_space<vmem>>, vector<8x128xf32>,
    } else {
    }
    %c0 = arith.constant 0 : index
    %c0_1 = arith.constant 0 : index
    %c0_2 = arith.constant 0 : index
    %3 = vector.load %arg2[%c0, %c0_1, %c0_2] : memref<1x32x32xf32, #tpu.memory_space<vmem>>, vector<1x32x32xf32>
    %4 = vector.shape_cast %3 : vector<1x32x32xf32> to vector<32x32xf32>
    %c0_3 = arith.constant 0 : index
    %c0_4 = arith.constant 0 : index
    %5 = vector.load %arg3[%c0_3, %c0_4] : memref<32x256xf32, #tpu.memory_space<vmem>>, vector<32x256xf32>
    %cst = arith.constant dense<0.000000e+00> : vector<32x256xf32>
    %6 = tpu.matmul %4, %5, %cst {dimension_numbers = #tpu.dot_dimension_numbers<[1], [0], [0], [1], [0, 0, 1, 1], [], []>} : vector<32x32xf32>, vector<32x256xf32>, vector<32x256xf32> -> vector<32x256xf32>
    %c0_5 = arith.constant 0 : index
    %c0_6 = arith.constant 0 : index
    %7 = vector.load %arg4[%c0_5, %c0_6] : memref<1x256xf32, #tpu.memory_space<vmem>>, vector<1x256xf32>
    %8 = vector.broadcast %7 : vector<1x256xf32> to vector<32x256xf32>
    %9 = arith.addf %6, %8 : vector<32x256xf32>
    %10 = vector.extract_strided_slice %9 {offsets = [0, 0], sizes = [32, 128], strides = [1, 1]} : vector<32x256xf32> to vector<32x128xf32>
    %11 = vector.extract_strided_slice %9 {offsets = [0, 128], sizes = [32, 128], strides = [1, 1]} : vector<32x256xf32> to vector<32x128xf32>
    %12 = arith.negf %11 : vector<32x128xf32>
    %13 = math.exp %12 : vector<32x128xf32>
    %cst_7 = arith.constant 1.000000e+00 : f32
    %14 = vector.broadcast %cst_7 : f32 to vector<32x128xf32>
    %15 = arith.addf %14, %13 : vector<32x128xf32>
    %16 = arith.divf %14, %15 : vector<32x128xf32>
    %17 = arith.mulf %10, %16 : vector<32x128xf32>
    %c1_i32 = arith.constant 1 : i32
    %18 = arith.cmpi ne, %arg1, %c1_i32 : i32
    %19 = arith.extui %18 : i1 to i32
    %c0_i32_8 = arith.constant 0 : i32
    %20 = arith.cmpi ne, %19, %c0_i32_8 : i32
    scf.if %20 {
      %27 = vector.shape_cast %17 : vector<32x128xf32> to vector<4x8x128xf32>
      %cst_13 = arith.constant dense<0xFF800000> : vector<8x128xf32>
      %28 = vector.multi_reduction <maximumf>, %27, %cst_13 [0] : vector<4x8x128xf32> to vector<8x128xf32>
      %c0_14 = arith.constant 0 : index
      %c0_15 = arith.constant 0 : index
      %29 = vector.load %arg10[%c0_14, %c0_15] : memref<8x128xf32, #tpu.memory_space<vmem>>, vector<8x128xf32>
      %30 = arith.maximumf %29, %28 : vector<8x128xf32>
      %c0_16 = arith.constant 0 : index
      %c0_17 = arith.constant 0 : index
      %31 = vector.load %arg10[%c0_16, %c0_17] : memref<8x128xf32, #tpu.memory_space<vmem>>, vector<8x128xf32>
      tpu.vector_store %arg10[%c0_16, %c0_17], %30 {strides = array<i32>} : memref<8x128xf32, #tpu.memory_space<vmem>>, vector<8x128xf32>,
    } else {
    }
    %c1_i32_9 = arith.constant 1 : i32
    %21 = arith.cmpi eq, %arg1, %c1_i32_9 : i32
    %22 = arith.extui %21 : i1 to i32
    %c0_i32_10 = arith.constant 0 : i32
    %23 = arith.cmpi ne, %22, %c0_i32_10 : i32
    scf.if %23 {
      %27 = tpu.iota {dimensions = array<i32: 0>} : vector<32x128xi32>
      %c1_i32_13 = arith.constant 1 : i32
      %28 = vector.broadcast %c1_i32_13 : i32 to vector<32x128xi32>
      %29 = arith.cmpi slt, %27, %28 : vector<32x128xi32>
      %cst_14 = arith.constant 0xFF800000 : f32
      %30 = vector.broadcast %cst_14 : f32 to vector<32x128xf32>
      %31 = arith.select %29, %17, %30 : vector<32x128xi1>, vector<32x128xf32>
      %32 = vector.shape_cast %31 : vector<32x128xf32> to vector<4x8x128xf32>
      %cst_15 = arith.constant dense<0xFF800000> : vector<8x128xf32>
      %33 = vector.multi_reduction <maximumf>, %32, %cst_15 [0] : vector<4x8x128xf32> to vector<8x128xf32>
      %c0_16 = arith.constant 0 : index
      %c0_17 = arith.constant 0 : index
      %34 = vector.load %arg10[%c0_16, %c0_17] : memref<8x128xf32, #tpu.memory_space<vmem>>, vector<8x128xf32>
      %35 = arith.maximumf %34, %33 : vector<8x128xf32>
      %c0_18 = arith.constant 0 : index
      %c0_19 = arith.constant 0 : index
      %36 = vector.load %arg10[%c0_18, %c0_19] : memref<8x128xf32, #tpu.memory_space<vmem>>, vector<8x128xf32>
      tpu.vector_store %arg10[%c0_18, %c0_19], %35 {strides = array<i32>} : memref<8x128xf32, #tpu.memory_space<vmem>>, vector<8x128xf32>,
    } else {
    }
    %c1_i32_11 = arith.constant 1 : i32
    %24 = arith.cmpi eq, %arg1, %c1_i32_11 : i32
    %25 = arith.extui %24 : i1 to i32
    %c0_i32_12 = arith.constant 0 : i32
    %26 = arith.cmpi ne, %25, %c0_i32_12 : i32
    scf.if %26 {
      %c0_13 = arith.constant 0 : index
      %c0_14 = arith.constant 0 : index
      %27 = vector.load %arg10[%c0_13, %c0_14] : memref<8x128xf32, #tpu.memory_space<vmem>>, vector<8x128xf32>
      %cst_15 = arith.constant dense<0xFF800000> : vector<128xf32>
      %28 = vector.multi_reduction <maximumf>, %27, %cst_15 [0] : vector<8x128xf32> to vector<128xf32>
      %29 = vector.shape_cast %28 : vector<128xf32> to vector<1x128xf32>
      %c0_16 = arith.constant 0 : index
      %c0_17 = arith.constant 0 : index
      %30 = vector.load %arg5[%c0_16, %c0_17] : memref<128x128xf32, #tpu.memory_space<vmem>>, vector<128x128xf32>
      %cst_18 = arith.constant dense<0.000000e+00> : vector<1x128xf32>
      %31 = tpu.matmul %29, %30, %cst_18 {dimension_numbers = #tpu.dot_dimension_numbers<[1], [0], [0], [1], [0, 0, 1, 1], [], []>} : vector<1x128xf32>, vector<128x128xf32>, vector<1x128xf32> -> vector<1x128xf32>
      %c0_19 = arith.constant 0 : index
      %c0_20 = arith.constant 0 : index
      %32 = vector.load %arg6[%c0_19, %c0_20] : memref<1x128xf32, #tpu.memory_space<vmem>>, vector<1x128xf32>
      %33 = arith.addf %31, %32 : vector<1x128xf32>
      %cst_21 = arith.constant 0.000000e+00 : f32
      %34 = vector.broadcast %cst_21 : f32 to vector<1x128xf32>
      %35 = arith.maximumf %33, %34 : vector<1x128xf32>
      %c0_22 = arith.constant 0 : index
      %c0_23 = arith.constant 0 : index
      %36 = vector.load %arg7[%c0_22, %c0_23] : memref<128x128xf32, #tpu.memory_space<vmem>>, vector<128x128xf32>
      %cst_24 = arith.constant dense<0.000000e+00> : vector<1x128xf32>
      %37 = tpu.matmul %35, %36, %cst_24 {dimension_numbers = #tpu.dot_dimension_numbers<[1], [0], [0], [1], [0, 0, 1, 1], [], []>} : vector<1x128xf32>, vector<128x128xf32>, vector<1x128xf32> -> vector<1x128xf32>
      %c0_25 = arith.constant 0 : index
      %c0_26 = arith.constant 0 : index
      %38 = vector.load %arg8[%c0_25, %c0_26] : memref<1x128xf32, #tpu.memory_space<vmem>>, vector<1x128xf32>
      %39 = arith.addf %37, %38 : vector<1x128xf32>
      %40 = vector.shape_cast %39 : vector<1x128xf32> to vector<1x1x128xf32>
      %c0_27 = arith.constant 0 : index
      %c0_28 = arith.constant 0 : index
      %c0_29 = arith.constant 0 : index
      %41 = vector.load %arg9[%c0_27, %c0_28, %c0_29] : memref<1x1x128xf32, #tpu.memory_space<vmem>>, vector<1x1x128xf32>
      tpu.vector_store %arg9[%c0_27, %c0_28, %c0_29], %40 {strides = array<i32>} : memref<1x1x128xf32, #tpu.memory_space<vmem>>, vector<1x1x128xf32>,
    } else {
    }
    return
  }
  func.func @transform_0(%arg0: i32, %arg1: i32) -> (i32, i32, i32) {
    %c0_i32 = arith.constant 0 : i32
    %c0_i32_0 = arith.constant 0 : i32
    return %arg0, %arg1, %c0_i32 : i32, i32, i32
  }
  func.func @transform_1(%arg0: i32, %arg1: i32) -> (i32, i32) {
    %c0_i32 = arith.constant 0 : i32
    %c0_i32_0 = arith.constant 0 : i32
    %c0_i32_1 = arith.constant 0 : i32
    return %c0_i32, %c0_i32_0 : i32, i32
  }
  func.func @transform_2(%arg0: i32, %arg1: i32) -> (i32, i32) {
    %c0_i32 = arith.constant 0 : i32
    %c0_i32_0 = arith.constant 0 : i32
    %c0_i32_1 = arith.constant 0 : i32
    return %c0_i32, %c0_i32_0 : i32, i32
  }
  func.func @transform_3(%arg0: i32, %arg1: i32) -> (i32, i32) {
    %c0_i32 = arith.constant 0 : i32
    %c0_i32_0 = arith.constant 0 : i32
    %c0_i32_1 = arith.constant 0 : i32
    return %c0_i32, %c0_i32_0 : i32, i32
  }
  func.func @transform_4(%arg0: i32, %arg1: i32) -> (i32, i32) {
    %c0_i32 = arith.constant 0 : i32
    %c0_i32_0 = arith.constant 0 : i32
    %c0_i32_1 = arith.constant 0 : i32
    return %c0_i32, %c0_i32_0 : i32, i32
  }
  func.func @transform_5(%arg0: i32, %arg1: i32) -> (i32, i32) {
    %c0_i32 = arith.constant 0 : i32
    %c0_i32_0 = arith.constant 0 : i32
    %c0_i32_1 = arith.constant 0 : i32
    return %c0_i32, %c0_i32_0 : i32, i32
  }
  func.func @transform_6(%arg0: i32, %arg1: i32) -> (i32, i32) {
    %c0_i32 = arith.constant 0 : i32
    %c0_i32_0 = arith.constant 0 : i32
    %c0_i32_1 = arith.constant 0 : i32
    return %c0_i32, %c0_i32_0 : i32, i32
  }
  func.func @transform_7(%arg0: i32, %arg1: i32) -> (i32, i32, i32) {
    %c0_i32 = arith.constant 0 : i32
    %c0_i32_0 = arith.constant 0 : i32
    %c0_i32_1 = arith.constant 0 : i32
    return %arg0, %c0_i32, %c0_i32_0 : i32, i32, i32
  }
}

module attributes {stable_mosaic.version = 11 : i64} {
  func.func @kernel(%arg0: i32, %arg1: i32, %arg2: memref<1x32x32xf32, #tpu.memory_space<vmem>>, %arg3: memref<32x256xf32, #tpu.memory_space<vmem>>, %arg4: memref<1x256xf32, #tpu.memory_space<vmem>>, %arg5: memref<128x128xf32, #tpu.memory_space<vmem>>, %arg6: memref<1x128xf32, #tpu.memory_space<vmem>>, %arg7: memref<128x128xf32, #tpu.memory_space<vmem>>, %arg8: memref<1x128xf32, #tpu.memory_space<vmem>>, %arg9: memref<1x1x128xf32, #tpu.memory_space<vmem>>, %arg10: memref<8x128xf32, #tpu.memory_space<vmem>>) attributes {dimension_semantics = [#tpu.dimension_semantics<parallel>, #tpu.dimension_semantics<arbitrary>], iteration_bounds = array<i64: 2, 2>, scalar_prefetch = 0 : i64, scratch_operands = 1 : i64, tpu.core_type = #tpu.core_type<tc>, window_params = [{transform_indices = @transform_0, window_bounds = array<i64: 1, 32, 32>}, {pipeline_mode = #tpu.pipeline_mode<synchronous>, transform_indices = @transform_1, window_bounds = array<i64: 32, 256>}, {pipeline_mode = #tpu.pipeline_mode<synchronous>, transform_indices = @transform_2, window_bounds = array<i64: 1, 256>}, {pipeline_mode = #tpu.pipeline_mode<synchronous>, transform_indices = @transform_3, window_bounds = array<i64: 128, 128>}, {pipeline_mode = #tpu.pipeline_mode<synchronous>, transform_indices = @transform_4, window_bounds = array<i64: 1, 128>}, {pipeline_mode = #tpu.pipeline_mode<synchronous>, transform_indices = @transform_5, window_bounds = array<i64: 128, 128>}, {pipeline_mode = #tpu.pipeline_mode<synchronous>, transform_indices = @transform_6, window_bounds = array<i64: 1, 128>}, {transform_indices = @transform_7, window_bounds = array<i64: 1, 1, 128>}]} {
    %c0_i32 = arith.constant 0 : i32
    %0 = arith.cmpi eq, %arg1, %c0_i32 : i32
    %1 = arith.extui %0 : i1 to i32
    %c0_i32_0 = arith.constant 0 : i32
    %2 = arith.cmpi ne, %1, %c0_i32_0 : i32
    scf.if %2 {
      %cst_13 = arith.constant 0xFF800000 : f32
      %27 = vector.broadcast %cst_13 : f32 to vector<8x128xf32>
      %c0_14 = arith.constant 0 : index
      %c0_15 = arith.constant 0 : index
      %28 = vector.load %arg10[%c0_14, %c0_15] : memref<8x128xf32, #tpu.memory_space<vmem>>, vector<8x128xf32>
      tpu.vector_store %arg10[%c0_14, %c0_15], %27 {strides = array<i32>} : memref<8x128xf32, #tpu.memory_space<vmem>>, vector<8x128xf32>,
    } else {
    }
    %c0 = arith.constant 0 : index
    %c0_1 = arith.constant 0 : index
    %c0_2 = arith.constant 0 : index
    %3 = vector.load %arg2[%c0, %c0_1, %c0_2] : memref<1x32x32xf32, #tpu.memory_space<vmem>>, vector<1x32x32xf32>
    %4 = vector.shape_cast %3 : vector<1x32x32xf32> to vector<32x32xf32>
    %c0_3 = arith.constant 0 : index
    %c0_4 = arith.constant 0 : index
    %5 = vector.load %arg3[%c0_3, %c0_4] : memref<32x256xf32, #tpu.memory_space<vmem>>, vector<32x256xf32>
    %cst = arith.constant dense<0.000000e+00> : vector<32x256xf32>
    %6 = tpu.matmul %4, %5, %cst {dimension_numbers = #tpu.dot_dimension_numbers<[1], [0], [0], [1], [0, 0, 1, 1], [], []>} : vector<32x32xf32>, vector<32x256xf32>, vector<32x256xf32> -> vector<32x256xf32>
    %c0_5 = arith.constant 0 : index
    %c0_6 = arith.constant 0 : index
    %7 = vector.load %arg4[%c0_5, %c0_6] : memref<1x256xf32, #tpu.memory_space<vmem>>, vector<1x256xf32>
    %8 = vector.broadcast %7 : vector<1x256xf32> to vector<32x256xf32>
    %9 = arith.addf %6, %8 : vector<32x256xf32>
    %10 = vector.extract_strided_slice %9 {offsets = [0, 0], sizes = [32, 128], strides = [1, 1]} : vector<32x256xf32> to vector<32x128xf32>
    %11 = vector.extract_strided_slice %9 {offsets = [0, 128], sizes = [32, 128], strides = [1, 1]} : vector<32x256xf32> to vector<32x128xf32>
    %12 = arith.negf %11 : vector<32x128xf32>
    %13 = math.exp %12 : vector<32x128xf32>
    %cst_7 = arith.constant 1.000000e+00 : f32
    %14 = vector.broadcast %cst_7 : f32 to vector<32x128xf32>
    %15 = arith.addf %14, %13 : vector<32x128xf32>
    %16 = arith.divf %14, %15 : vector<32x128xf32>
    %17 = arith.mulf %10, %16 : vector<32x128xf32>
    %c1_i32 = arith.constant 1 : i32
    %18 = arith.cmpi ne, %arg1, %c1_i32 : i32
    %19 = arith.extui %18 : i1 to i32
    %c0_i32_8 = arith.constant 0 : i32
    %20 = arith.cmpi ne, %19, %c0_i32_8 : i32
    scf.if %20 {
      %27 = vector.shape_cast %17 : vector<32x128xf32> to vector<4x8x128xf32>
      %cst_13 = arith.constant dense<0xFF800000> : vector<8x128xf32>
      %28 = vector.multi_reduction <maximumf>, %27, %cst_13 [0] : vector<4x8x128xf32> to vector<8x128xf32>
      %c0_14 = arith.constant 0 : index
      %c0_15 = arith.constant 0 : index
      %29 = vector.load %arg10[%c0_14, %c0_15] : memref<8x128xf32, #tpu.memory_space<vmem>>, vector<8x128xf32>
      %30 = arith.maximumf %29, %28 : vector<8x128xf32>
      %c0_16 = arith.constant 0 : index
      %c0_17 = arith.constant 0 : index
      %31 = vector.load %arg10[%c0_16, %c0_17] : memref<8x128xf32, #tpu.memory_space<vmem>>, vector<8x128xf32>
      tpu.vector_store %arg10[%c0_16, %c0_17], %30 {strides = array<i32>} : memref<8x128xf32, #tpu.memory_space<vmem>>, vector<8x128xf32>,
    } else {
    }
    %c1_i32_9 = arith.constant 1 : i32
    %21 = arith.cmpi eq, %arg1, %c1_i32_9 : i32
    %22 = arith.extui %21 : i1 to i32
    %c0_i32_10 = arith.constant 0 : i32
    %23 = arith.cmpi ne, %22, %c0_i32_10 : i32
    scf.if %23 {
      %27 = tpu.iota {dimensions = array<i32: 0>} : vector<32x128xi32>
      %c1_i32_13 = arith.constant 1 : i32
      %28 = vector.broadcast %c1_i32_13 : i32 to vector<32x128xi32>
      %29 = arith.cmpi slt, %27, %28 : vector<32x128xi32>
      %cst_14 = arith.constant 0xFF800000 : f32
      %30 = vector.broadcast %cst_14 : f32 to vector<32x128xf32>
      %31 = arith.select %29, %17, %30 : vector<32x128xi1>, vector<32x128xf32>
      %32 = vector.shape_cast %31 : vector<32x128xf32> to vector<4x8x128xf32>
      %cst_15 = arith.constant dense<0xFF800000> : vector<8x128xf32>
      %33 = vector.multi_reduction <maximumf>, %32, %cst_15 [0] : vector<4x8x128xf32> to vector<8x128xf32>
      %c0_16 = arith.constant 0 : index
      %c0_17 = arith.constant 0 : index
      %34 = vector.load %arg10[%c0_16, %c0_17] : memref<8x128xf32, #tpu.memory_space<vmem>>, vector<8x128xf32>
      %35 = arith.maximumf %34, %33 : vector<8x128xf32>
      %c0_18 = arith.constant 0 : index
      %c0_19 = arith.constant 0 : index
      %36 = vector.load %arg10[%c0_18, %c0_19] : memref<8x128xf32, #tpu.memory_space<vmem>>, vector<8x128xf32>
      tpu.vector_store %arg10[%c0_18, %c0_19], %35 {strides = array<i32>} : memref<8x128xf32, #tpu.memory_space<vmem>>, vector<8x128xf32>,
    } else {
    }
    %c1_i32_11 = arith.constant 1 : i32
    %24 = arith.cmpi eq, %arg1, %c1_i32_11 : i32
    %25 = arith.extui %24 : i1 to i32
    %c0_i32_12 = arith.constant 0 : i32
    %26 = arith.cmpi ne, %25, %c0_i32_12 : i32
    scf.if %26 {
      %c0_13 = arith.constant 0 : index
      %c0_14 = arith.constant 0 : index
      %27 = vector.load %arg10[%c0_13, %c0_14] : memref<8x128xf32, #tpu.memory_space<vmem>>, vector<8x128xf32>
      %cst_15 = arith.constant dense<0xFF800000> : vector<128xf32>
      %28 = vector.multi_reduction <maximumf>, %27, %cst_15 [0] : vector<8x128xf32> to vector<128xf32>
      %29 = vector.shape_cast %28 : vector<128xf32> to vector<1x128xf32>
      %c0_16 = arith.constant 0 : index
      %c0_17 = arith.constant 0 : index
      %30 = vector.load %arg5[%c0_16, %c0_17] : memref<128x128xf32, #tpu.memory_space<vmem>>, vector<128x128xf32>
      %cst_18 = arith.constant dense<0.000000e+00> : vector<1x128xf32>
      %31 = tpu.matmul %29, %30, %cst_18 {dimension_numbers = #tpu.dot_dimension_numbers<[1], [0], [0], [1], [0, 0, 1, 1], [], []>} : vector<1x128xf32>, vector<128x128xf32>, vector<1x128xf32> -> vector<1x128xf32>
      %c0_19 = arith.constant 0 : index
      %c0_20 = arith.constant 0 : index
      %32 = vector.load %arg6[%c0_19, %c0_20] : memref<1x128xf32, #tpu.memory_space<vmem>>, vector<1x128xf32>
      %33 = arith.addf %31, %32 : vector<1x128xf32>
      %cst_21 = arith.constant 0.000000e+00 : f32
      %34 = vector.broadcast %cst_21 : f32 to vector<1x128xf32>
      %35 = arith.maximumf %33, %34 : vector<1x128xf32>
      %c0_22 = arith.constant 0 : index
      %c0_23 = arith.constant 0 : index
      %36 = vector.load %arg7[%c0_22, %c0_23] : memref<128x128xf32, #tpu.memory_space<vmem>>, vector<128x128xf32>
      %cst_24 = arith.constant dense<0.000000e+00> : vector<1x128xf32>
      %37 = tpu.matmul %35, %36, %cst_24 {dimension_numbers = #tpu.dot_dimension_numbers<[1], [0], [0], [1], [0, 0, 1, 1], [], []>} : vector<1x128xf32>, vector<128x128xf32>, vector<1x128xf32> -> vector<1x128xf32>
      %c0_25 = arith.constant 0 : index
      %c0_26 = arith.constant 0 : index
      %38 = vector.load %arg8[%c0_25, %c0_26] : memref<1x128xf32, #tpu.memory_space<vmem>>, vector<1x128xf32>
      %39 = arith.addf %37, %38 : vector<1x128xf32>
      %40 = vector.shape_cast %39 : vector<1x128xf32> to vector<1x1x128xf32>
      %c0_27 = arith.constant 0 : index
      %c0_28 = arith.constant 0 : index
      %c0_29 = arith.constant 0 : index
      %41 = vector.load %arg9[%c0_27, %c0_28, %c0_29] : memref<1x1x128xf32, #tpu.memory_space<vmem>>, vector<1x1x128xf32>
      tpu.vector_store %arg9[%c0_27, %c0_28, %c0_29], %40 {strides = array<i32>} : memref<1x1x128xf32, #tpu.memory_space<vmem>>, vector<1x1x128xf32>,
    } else {
    }
    return
  }
  func.func @transform_0(%arg0: i32, %arg1: i32) -> (i32, i32, i32) {
    %c0_i32 = arith.constant 0 : i32
    %c0_i32_0 = arith.constant 0 : i32
    return %arg0, %arg1, %c0_i32 : i32, i32, i32
  }
  func.func @transform_1(%arg0: i32, %arg1: i32) -> (i32, i32) {
    %c0_i32 = arith.constant 0 : i32
    %c0_i32_0 = arith.constant 0 : i32
    %c0_i32_1 = arith.constant 0 : i32
    return %c0_i32, %c0_i32_0 : i32, i32
  }
  func.func @transform_2(%arg0: i32, %arg1: i32) -> (i32, i32) {
    %c0_i32 = arith.constant 0 : i32
    %c0_i32_0 = arith.constant 0 : i32
    %c0_i32_1 = arith.constant 0 : i32
    return %c0_i32, %c0_i32_0 : i32, i32
  }
  func.func @transform_3(%arg0: i32, %arg1: i32) -> (i32, i32) {
    %c0_i32 = arith.constant 0 : i32
    %c0_i32_0 = arith.constant 0 : i32
    %c0_i32_1 = arith.constant 0 : i32
    return %c0_i32, %c0_i32_0 : i32, i32
  }
  func.func @transform_4(%arg0: i32, %arg1: i32) -> (i32, i32) {
    %c0_i32 = arith.constant 0 : i32
    %c0_i32_0 = arith.constant 0 : i32
    %c0_i32_1 = arith.constant 0 : i32
    return %c0_i32, %c0_i32_0 : i32, i32
  }
  func.func @transform_5(%arg0: i32, %arg1: i32) -> (i32, i32) {
    %c0_i32 = arith.constant 0 : i32
    %c0_i32_0 = arith.constant 0 : i32
    %c0_i32_1 = arith.constant 0 : i32
    return %c0_i32, %c0_i32_0 : i32, i32
  }
  func.func @transform_6(%arg0: i32, %arg1: i32) -> (i32, i32) {
    %c0_i32 = arith.constant 0 : i32
    %c0_i32_0 = arith.constant 0 : i32
    %c0_i32_1 = arith.constant 0 : i32
    return %c0_i32, %c0_i32_0 : i32, i32
  }
  func.func @transform_7(%arg0: i32, %arg1: i32) -> (i32, i32, i32) {
    %c0_i32 = arith.constant 0 : i32
    %c0_i32_0 = arith.constant 0 : i32
    %c0_i32_1 = arith.constant 0 : i32
    return %arg0, %c0_i32, %c0_i32_0 : i32, i32, i32
  }
}

</mosaic_0001>

<bundles_post_ra>
// kernel: tpu_custom_call.1
= control target key start
LH: loop header
LB: loop body
LE: loop exit
PB: predicated region body
PF: predicated region fallthrough
CT: control target
= control target key end

     0   :  { %12 = vsyncpa [#allocation4], 0  ;;  %s1349_s0 = inlined_call_operand.vmem [shape: f32[2,33,32], index: 0, kind: input, shape index: {}]   ;;  %s1350_s1 = inlined_call_operand.hbm [shape: f32[32,256], index: 1, kind: input, shape index: {}]   ;;  %s1351_s2 = inlined_call_operand.vmem [shape: f32[1,256], index: 2, kind: input, shape index: {}]   ;;  %s1352_s3 = inlined_call_operand.vmem [shape: f32[128,128], index: 3, kind: input, shape index: {}]   ;;  %s1353_s4 = inlined_call_operand.vmem [shape: f32[1,128], index: 4, kind: input, shape index: {}]   ;;  %s1354_s5 = inlined_call_operand.hbm [shape: f32[128,128], index: 5, kind: input, shape index: {}]   ;;  %s1355_s6 = inlined_call_operand.vmem [shape: f32[1,128], index: 6, kind: input, shape index: {}]   ;;  %s1356_s7 = inlined_call_operand.hbm [shape: f32[2,1,128], index: 7, kind: output, shape index: {}]  }
   0x1   :  { %13 = vsyncpa [#allocation7], 0 }
   0x2   :  { %14 = vsyncpa [#allocation5], 0 }
   0x3   :  { %16 = vsyncpa [#allocation5 + $0x1], 0  ;;  %s1116_s24 = smov 0   ;;  %s1118_s25 = smov 0  }
   0x4   :  { %s1120_s26 = smov 0   ;;  %s1122_s27 = smov 0  }
   0x5   :  { %s1124_s28 = smov 0   ;;  %s1126_s29 = smov 0  }
   0x6   :  { %s1128_s30 = smov 0   ;;  %s1130_s8 = smov 0  }
   0x7 LB: > { %1360 = sst [smem:[#allocation12_spill]] %s1059_s29  ;;  %s755_s9 = sadd.s32 4294967295, %s1067_s8   ;;  %s1067_s8 = sphi %s1130_s8, %s22_s8   ;;  %s1063_s30 = sphi %s1128_s30, %s1371_s30   ;;  %s1059_s29 = sphi %s1126_s29, %s1370_s29   ;;  %s1055_s28 = sphi %s1124_s28, %s1369_s28   ;;  %s1051_s27 = sphi %s1122_s27, %s1368_s27   ;;  %s1047_s26 = sphi %s1120_s26, %s1374_s26   ;;  %s1043_s25 = sphi %s1118_s25, %s1373_s25   ;;  %s1039_s24 = sphi %s1116_s24, %s1372_s24  }
   0x8   : > { %1361 = sst [smem:[#allocation13_spill]] %s1063_s30  ;;  %s756_s10 = sadd.s32 4294967294, %s1067_s8  }
   0x9   : > { %s31_s11 = sadd.s32 1, %s1059_s29  ;;  %s34_s12 = sadd.s32 1, %s1063_s30 }
   0xa   : > { %p32_p0 = scmp.ge.s32.totalorder %s31_s11, 2  ;;  %s195_s13 = sadd.s32 1, %s1047_s26 }
   0xb   : > { %p205_p1 = scmp.ne.s32.totalorder %s1047_s26, %s1043_s25  ;;  %p206_p2 = scmp.eq.s32.totalorder %s755_s9, 3 }
   0xc   : > { %s1376_s11 = smov (%p32_p0, %s31_s11), 0  ;;  %s1378_s12 = smov (!%p32_p0, %s34_s12), %s1063_s30 }
   0xd   : > { %1362 = sst [smem:[#allocation14_spill]] %s1376_s11  ;;  %p1166_p3 = por %p206_p2, %p205_p1 }
   0xe   : > { %p211_p4 = scmp.ne.s32.totalorder %s1043_s25, %s1039_s24  ;;  %p36_p5 = scmp.ge.s32.totalorder %s1378_s12, 2 }
   0xf   : > { %p212_p6 = scmp.eq.s32.totalorder %s756_s10, 3  ;;  %p757_p7 = scmp.ge.s32.totalorder %s1067_s8, 1 }
  0x10   : > { %p219_p8 = scmp.lt.s32.totalorder %s1067_s8, 5  ;;  %s1380_s12 = smov (%p36_p5, %s1378_s12), 0 }
  0x11   : > { %1364 = sst [smem:[#allocation15_spill]] %s1380_s12  ;;  %p1176_p9 = por %p212_p6, %p211_p4 }
  0x12   : > { %p1180_p10 = pnand %p757_p7, %p219_p8  ;;  %s192_s17 = ssub.s32 %s1063_s30, %s1380_s12 }
  0x13   : > { %p193_p11 = scmp.eq.s32.totalorder %s192_s17, 0  ;;  %p1188_p13 = scmp.eq.s32.totalorder %s755_s9, 0 }
  0x14   : > { %p802_p12 = pneg %p1180_p10  ;;  %s230_s21 = sshll.u32 %s1350_s1, 4  ;;  %s231_s21 = int_to_ptr.hbm [resolvable:$true] %s230_s21 }
  0x15   : > { %s1196_s22 = scalar_select %p193_p11, %s1047_s26, %s195_s13  }
  0x16   : > { %s1069_s23 = smov [#allocation3]   ;;  %p803_p0 = pnand %p1188_p13, %p802_p12 }
  0x17   : > { %s232_s10 = sshll.u32 %s1069_s23, 4  ;;  %s1070_s17 = smov 256   ;;  %s233_s10 = int_to_ptr.vmem [resolvable:$true] %s232_s10 }
  0x18   : > { %s1071_s12 = smov 16   ;;  %s253_s30 = sshll.u32 %s1354_s5, 4  ;;  %s254_s30 = int_to_ptr.hbm [resolvable:$true] %s253_s30 }
  0x19   : > { %805 = dma.hbm_to_vmem [thread:$0]  (!%p803_p0), %s231_s21, 1024, %s233_s10, [#allocation4], %s1070_s17, %s1070_s17, %s1071_s12  }
  0x1a   : > { %s1072_s29 = smov [#allocation6]   ;;  %s1073_s20 = smov 128  }
  0x1b   : > { %s255_s19 = sshll.u32 %s1072_s29, 4  ;;  %s1074_s13 = smov 8   ;;  %s256_s19 = int_to_ptr.vmem [resolvable:$true] %s255_s19 }
  0x1c   : > { %808 = dma.hbm_to_vmem [thread:$0]  (!%p803_p0), %s254_s30, 2048, %s256_s19, [#allocation7], %s1073_s20, %s1073_s20, %s1074_s13  }
  0x1d   : > { %295 = sbr.rel (%p1180_p10) target bundleno = 549 (0x225), region = 48 }
  0x22   : > { %1026 = dma.done.wait (%p1188_p13), [#allocation4], 1024  }
  0x23   : > { %1028 = vsyncadd (%p1188_p13), [#allocation4], 4294966272 }
  0x24   : > { %1030 = dma.done.wait (%p1188_p13), [#allocation7], 2048  }
  0x25   : > { %1032 = vsyncadd (%p1188_p13), [#allocation7], 4294965248  ;;  %s338_s29 = sand.u32 1, %s1043_s25   ;;  %s764_s30 = sshll.u32 %s1051_s27, 2 }
  0x26   : > { %p345_p1 = scmp.lt.s32.totalorder %s1055_s28, 1  ;;  %p347_p2 = scmp.lt.s32.totalorder %s764_s30, 4 }
  0x27   : > { %s1224_s18 = scalar_lea.vmem [#allocation8], %s338_s29  ;;  %p766_p4 = scmp.ne.s32.totalorder %s1051_s27, 0 }
  0x28   : > { %s346_s11 = scalar_select %p345_p1, %s1055_s28, 1 }
  0x29   : > { %s1382_s30 = smov (!%p347_p2, %s764_s30), 4 }
  0x2a   : > { %s791_s12 = smul.u32 5, %s346_s11 }
  0x2b   : > { %361 = sbr.rel (%p766_p4) target bundleno = 50 (0x32), region = 60 }
  0x2c   : > { %s350_s16 = sadd.s32 %s791_s12, %s1382_s30 }
  0x2d   : > { %s765_s21 = sshll.u32 %s350_s16, 3 }
  0x2e   : > { %s1220_s17 = scalar_lea.vmem %s1349_s0, %s765_s21 }
  0x30   : > { %v1075_v0 = vmov -inf  }
  0x31   : > { %362 = vst [vmem:[#allocation2] sm:$0xff] %v1075_v0 }
  0x32 PF: > { %v374_v1 = vld [vmem:[#allocation3 + $0x38] sm:$0xff]  ;;  %v372_v2 = vld [vmem:[#allocation3 + $0x28] sm:$0xff]  ;;  %v373_v4 = vld [vmem:[#allocation3 + $0x30] sm:$0xff]  ;;  %vm381_vm0 = vcmask 261120   ;;  %p779_p5 = scmp.eq.s32.totalorder %s1051_s27, 1 }
  0x33   : > { %435 = vmatpush.msra.mxu1 %v374_v1  ;;  %787 = vmatpush.msra.mxu3 %v374_v1  ;;  %v370_v3 = vld [vmem:[#allocation3 + $0x18] sm:$0xff]  ;;  %v371_v5 = vld [vmem:[#allocation3 + $0x20] sm:$0xff]  ;;  %v368_v6 = vld [vmem:[#allocation3 + $0x8] sm:$0xff] }
  0x34   : > { %406 = vmatpush.msra.mxu0 %v373_v4  ;;  %783 = vmatpush.msra.mxu2 %v373_v4  ;;  %v363_v7 = vld [vmem:[%s1220_s17] sm:$0xff]  ;;  %v365_v8 = vld [vmem:[%s1220_s17 + $0x10] sm:$0xff]  ;;  %v369_v9 = vld [vmem:[#allocation3 + $0x10] sm:$0xff] }
  0x35   : > { %436 = vmatpush.msra.mxu1 %v372_v2  ;;  %788 = vmatpush.msra.mxu3 %v372_v2  ;;  %v367_v10 = vld [vmem:[#allocation3] sm:$0xff]  ;;  %v366_v12 = vld [vmem:[%s1220_s17 + $0x18] sm:$0xff]  ;;  %v375_v13 = vld [vmem:[%s1351_s2] sm:$0x3] }
  0x36   : > { %407 = vmatpush.msra.mxu0 %v371_v5  ;;  %784 = vmatpush.msra.mxu2 %v371_v5  ;;  %v364_v11 = vld [vmem:[%s1220_s17 + $0x8] sm:$0xff]  ;;  %v378_v14 = vperm.slane %v375_v13, 1  ;;  %v377_v36 = vperm.slane %v375_v13, 0 }
  0x37   : > { %437 = vmatpush.msra.mxu1 %v370_v3  ;;  %789 = vmatpush.msra.mxu3 %v370_v3 }
  0x38   : > { %408 = vmatpush.msra.mxu0 %v369_v9  ;;  %785 = vmatpush.msra.mxu2 %v369_v9 }
  0x39   : > { %438 = vmatpush.msra.mxu1 %v368_v6  ;;  %790 = vmatpush.msra.mxu3 %v368_v6 }
  0x3a   : > { %771 = vmatmul.msk.f32.vlgmr.msra.gmra.mxu1 %vm381_vm0, %v363_v7  ;;  %773 = vmatmul.msk.f32.vlgmr.msra.gmra.mxu3 %vm381_vm0, %v365_v8 }
  0x3b   : > { %409 = vmatpush.msra.mxu0 %v367_v10  ;;  %786 = vmatpush.msra.mxu2 %v367_v10 }
  0x3c   : > { %767 = vmatmul.msk.f32.vlgmr.msra.gmra.mxu0 %vm381_vm0, %v363_v7  ;;  %769 = vmatmul.msk.f32.vlgmr.msra.gmra.mxu2 %vm381_vm0, %v365_v8 }
  0x42   : > { %772 = vmatmul.msk.f32.gmra.mxu1 %vm381_vm0, %v364_v11  ;;  %774 = vmatmul.msk.f32.gmra.mxu3 %vm381_vm0, %v366_v12 }
  0x44   : > { %768 = vmatmul.msk.f32.gmra.mxu0 %vm381_vm0, %v364_v11  ;;  %770 = vmatmul.msk.f32.gmra.mxu2 %vm381_vm0, %v366_v12 }
  0xb7   : > { %v440_v15 = vpop.f32.mrf.mxu1 }
  0xb8   : > { %v441_v16 = vadd.f32 %v440_v15, %v378_v14 }
  0xb9   : > { %v411_v34 = vpop.f32.mrf.mxu0 }
  0xba   : > { %v775_v17 = vmul.f32 -1.442695, %v441_v16  ;;  %v412_v44 = vadd.f32 %v411_v34, %v377_v36 }
  0xbc   : > { %889 = vpow2.f32 %v775_v17 }
  0xbd   : > { %v446_v18 = vpop.f32.mrf.mxu3 }
  0xbe   : > { %v447_v19 = vadd.f32 %v446_v18, %v378_v14 }
  0xbf   : > { %v443_v20 = vpop.f32.mrf.mxu1  ;;  %v417_v49 = vpop.f32.mrf.mxu2 }
  0xc0   : > { %v777_v21 = vmul.f32 -1.442695, %v447_v19  ;;  %v444_v22 = vadd.f32 %v443_v20, %v378_v14  ;;  %v418_v60 = vadd.f32 %v417_v49, %v377_v36 }
  0xc1   : > { %v414_v58 = vpop.f32.mrf.mxu0 }
  0xc2   : > { %v890_v23 = vpop.eup %889  ;;  %891 = vpow2.f32 %v777_v21  ;;  %v776_v24 = vmul.f32 -1.442695, %v444_v22  ;;  %v415_v3 = vadd.f32 %v414_v58, %v377_v36 }
  0xc3   : > { %v464_v25 = vadd.f32 1.0, %v890_v23 }
  0xc4   : > { %893 = vpow2.f32 %v776_v24 }
  0xc5   : > { %895 = vrcp.f32 %v464_v25  ;;  %v449_v26 = vpop.f32.mrf.mxu3  ;;  %v479_v38 = vand.u32 2147483648, %v464_v25  ;;  %vm473_vm1 = vweird.f32 %v464_v25  ;;  %v477_v41 = vand.u32 2147483647, %v464_v25 }
  0xc6   : > { %v450_v27 = vadd.f32 %v449_v26, %v378_v14 }
  0xc7   : > { %v480_v48 = vor.u32 1.1754944e-38, %v479_v38  ;;  %vm478_vm4 = vcmp.eq.f32.partialorder %v477_v41, 8.507059e+37  ;;  %v420_v13 = vpop.f32.mrf.mxu2 }
  0xc8   : > { %v892_v28 = vpop.eup %891  ;;  %v778_v29 = vmul.f32 -1.442695, %v450_v27  ;;  %v421_v18 = vadd.f32 %v420_v13, %v377_v36 }
  0xc9   : > { %v466_v30 = vadd.f32 1.0, %v892_v28 }
  0xca   : > { %v894_v31 = vpop.eup %893  ;;  %897 = vpow2.f32 %v778_v29 }
  0xcb   : > { %v896_v32 = vpop.eup %895  ;;  %899 = vrcp.f32 %v466_v30  ;;  %v465_v33 = vadd.f32 1.0, %v894_v31  ;;  %v507_v54 = vand.u32 2147483647, %v466_v30  ;;  %v509_v55 = vand.u32 2147483648, %v466_v30 }
  0xcc   : > { %v469_v35 = vmul.f32 %v896_v32, %v464_v25  ;;  %vm474_vm2 = vweird.f32 %v896_v32  ;;  %vm503_vm6 = vweird.f32 %v466_v30 }
  0xcd   : > { %901 = vrcp.f32 %v465_v33  ;;  %vm475_vm3 = vmor %vm473_vm1, %vm474_vm2  ;;  %vm488_vm7 = vweird.f32 %v465_v33  ;;  %v494_v61 = vand.u32 2147483648, %v465_v33  ;;  %v492_v0 = vand.u32 2147483647, %v465_v33 }
  0xce   : > { %v470_v37 = vsub.f32 1.0, %v469_v35  ;;  %v510_v2 = vor.u32 1.1754944e-38, %v509_v55  ;;  %vm508_vm10 = vcmp.eq.f32.partialorder %v507_v54, 8.507059e+37 }
  0xcf   : > { %v495_v8 = vor.u32 1.1754944e-38, %v494_v61  ;;  %vm493_vm12 = vcmp.eq.f32.partialorder %v492_v0, 8.507059e+37 }
  0xd0   : > { %v898_v39 = vpop.eup %897  ;;  %v471_v40 = vmul.f32 %v896_v32, %v470_v37 }
  0xd1   : > { %v900_v42 = vpop.eup %899  ;;  %v467_v43 = vadd.f32 1.0, %v898_v39 }
  0xd2   : > { %v472_v45 = vadd.f32 %v896_v32, %v471_v40  ;;  %v499_v46 = vmul.f32 %v900_v42, %v466_v30  ;;  %vm504_vm5 = vweird.f32 %v900_v42 }
  0xd3   : > { %v902_v47 = vpop.eup %901  ;;  %903 = vrcp.f32 %v467_v43  ;;  %vm505_vm9 = vmor %vm503_vm6, %vm504_vm5  ;;  %v524_v14 = vand.u32 2147483648, %v467_v43  ;;  %v522_v17 = vand.u32 2147483647, %v467_v43  ;;  %vm518_vm14 = vweird.f32 %v467_v43 }
  0xd4   : > { %v476_v50 = vsel %vm475_vm3, %v896_v32, %v472_v45  ;;  %v500_v51 = vsub.f32 1.0, %v499_v46  ;;  %v484_v52 = vmul.f32 %v902_v47, %v465_v33  ;;  %vm489_vm8 = vweird.f32 %v902_v47 }
  0xd5   : > { %v481_v53 = vsel %vm478_vm4, %v480_v48, %v476_v50  ;;  %vm490_vm11 = vmor %vm488_vm7, %vm489_vm8  ;;  %v525_v20 = vor.u32 1.1754944e-38, %v524_v14  ;;  %vm523_vm0 = vcmp.eq.f32.partialorder %v522_v17, 8.507059e+37 }
  0xd6   : > { %v1242_v56 = vmul.f32 %v481_v53, %v412_v44  ;;  %v501_v57 = vmul.f32 %v900_v42, %v500_v51  ;;  %v485_v59 = vsub.f32 1.0, %v484_v52 }
  0xd8   : > { %v502_v62 = vadd.f32 %v900_v42, %v501_v57  ;;  %v486_v63 = vmul.f32 %v902_v47, %v485_v59 }
  0xd9   : > { %v904_v1 = vpop.eup %903 }
  0xda   : > { %v506_v4 = vsel %vm505_vm9, %v900_v42, %v502_v62  ;;  %v487_v5 = vadd.f32 %v902_v47, %v486_v63  ;;  %v514_v6 = vmul.f32 %v904_v1, %v467_v43  ;;  %vm519_vm13 = vweird.f32 %v904_v1 }
  0xdb   : > { %v511_v7 = vsel %vm508_vm10, %v510_v2, %v506_v4  ;;  %vm520_vm15 = vmor %vm518_vm14, %vm519_vm13 }
  0xdc   : > { %v530_v9 = vmul.f32 %v511_v7, %v418_v60  ;;  %v491_v10 = vsel %vm490_vm11, %v902_v47, %v487_v5  ;;  %v515_v11 = vsub.f32 1.0, %v514_v6 }
  0xdd   : > { %v496_v12 = vsel %vm493_vm12, %v495_v8, %v491_v10 }
  0xde   : > { %v529_v15 = vmul.f32 %v496_v12, %v415_v3  ;;  %v516_v16 = vmul.f32 %v904_v1, %v515_v11 }
  0xe0   : > { %v517_v19 = vadd.f32 %v904_v1, %v516_v16  ;;  %535 = sbr.rel (%p779_p5) target bundleno = 237 (0xed), region = 64 }
  0xe2   : > { %v521_v21 = vsel %vm520_vm15, %v904_v1, %v517_v19 }
  0xe3   : > { %v526_v22 = vsel %vm523_vm0, %v525_v20, %v521_v21 }
  0xe4   : > { %v531_v23 = vmul.f32 %v526_v22, %v421_v18 }
  0xe5   : > { %v536_v24 = vmax.f32 %v1242_v56, %v529_v15  ;;  %v539_v26 = vld [vmem:[#allocation2] sm:$0xff] }
  0xe6   : > { %v537_v25 = vmax.f32 %v530_v9, %v531_v23 }
  0xe8   : > { %v538_v27 = vmax.f32 %v536_v24, %v537_v25 }
  0xea   : > { %v540_v28 = vmax.f32 %v539_v26, %v538_v27 }
  0xec   : > { %541 = vst [vmem:[#allocation2] sm:$0xff] %v540_v28 }
  0xed PF: > { %p780_p6 = scmp.ne.s32.totalorder %s1051_s27, 1 }
  0xef   : > { %545 = sbr.rel (%p780_p6) target bundleno = 535 (0x217), region = 68 }
  0xf4   : > { %v587_v29 = vld [vmem:[%s1352_s3 + $0x78] sm:$0xff]  ;;  %v586_v30 = vld [vmem:[%s1352_s3 + $0x70] sm:$0xff]  ;;  %v546_v31 = vlaneseq  ;;  %v585_v32 = vld [vmem:[%s1352_s3 + $0x68] sm:$0xff] }
  0xf5   : > { %589 = vmatpush.msra.mxu0 %v587_v29  ;;  %v584_v34 = vld [vmem:[%s1352_s3 + $0x60] sm:$0xff]  ;;  %v583_v38 = vld [vmem:[%s1352_s3 + $0x58] sm:$0xff]  ;;  %v623_v41 = vld [vmem:[#allocation6 + $0x68] sm:$0xff] }
  0xf6   : > { %v547_v33 = vshrl.u32 %v546_v31, 7  ;;  %v562_v36 = vld [vmem:[#allocation2] sm:$0xff]  ;;  %v624_v40 = vld [vmem:[#allocation6 + $0x70] sm:$0xff]  ;;  %v582_v42 = vld [vmem:[%s1352_s3 + $0x50] sm:$0xff] }
  0xf7   : > { %590 = vmatpush.msra.mxu0 %v586_v30  ;;  %v625_v37 = vld [vmem:[#allocation6 + $0x78] sm:$0xff]  ;;  %v622_v44 = vld [vmem:[#allocation6 + $0x60] sm:$0xff]  ;;  %v620_v49 = vld [vmem:[#allocation6 + $0x50] sm:$0xff] }
  0xf8   : > { %vm551_vm1 = vcmp.lt.s32.totalorder %v547_v33, 1  ;;  %627 = vmatpush.msra.mxu1 %v625_v37  ;;  %v581_v45 = vld [vmem:[%s1352_s3 + $0x48] sm:$0xff]  ;;  %v621_v46 = vld [vmem:[#allocation6 + $0x58] sm:$0xff]  ;;  %v579_v50 = vld [vmem:[%s1352_s3 + $0x38] sm:$0xff] }
  0xf9   : > { %591 = vmatpush.msra.mxu0 %v585_v32  ;;  %v555_v35 = vsel %vm551_vm1, %v1242_v56, -inf  ;;  %v580_v47 = vld [vmem:[%s1352_s3 + $0x40] sm:$0xff]  ;;  %v619_v51 = vld [vmem:[#allocation6 + $0x48] sm:$0xff]  ;;  %v618_v54 = vld [vmem:[#allocation6 + $0x40] sm:$0xff] }
  0xfa   : > { %v563_v39 = vmax.f32 %v562_v36, %v555_v35  ;;  %628 = vmatpush.msra.mxu1 %v624_v40  ;;  %v578_v52 = vld [vmem:[%s1352_s3 + $0x30] sm:$0xff]  ;;  %v577_v55 = vld [vmem:[%s1352_s3 + $0x28] sm:$0xff]  ;;  %v617_v56 = vld [vmem:[#allocation6 + $0x38] sm:$0xff] }
  0xfb   : > { %592 = vmatpush.msra.mxu0 %v584_v34  ;;  %v576_v57 = vld [vmem:[%s1352_s3 + $0x20] sm:$0xff]  ;;  %v616_v59 = vld [vmem:[#allocation6 + $0x30] sm:$0xff]  ;;  %v615_v61 = vld [vmem:[#allocation6 + $0x28] sm:$0xff] }
  0xfc   : > { %564 = vst [vmem:[#allocation2] sm:$0xff] %v563_v39  ;;  %v566_v43 = vrot.slane %v563_v39, 4  ;;  %629 = vmatpush.msra.mxu1 %v623_v41  ;;  %v575_v60 = vld [vmem:[%s1352_s3 + $0x18] sm:$0xff]  ;;  %v574_v62 = vld [vmem:[%s1352_s3 + $0x10] sm:$0xff]  ;;  %v614_v0 = vld [vmem:[#allocation6 + $0x20] sm:$0xff] }
  0xfd   : > { %593 = vmatpush.msra.mxu0 %v583_v38  ;;  %v573_v1 = vld [vmem:[%s1352_s3 + $0x8] sm:$0xff]  ;;  %v613_v2 = vld [vmem:[#allocation6 + $0x18] sm:$0xff]  ;;  %v612_v5 = vld [vmem:[#allocation6 + $0x10] sm:$0xff] }
  0xfe   : > { %v567_v48 = vmax.f32 %v563_v39, %v566_v43  ;;  %630 = vmatpush.msra.mxu1 %v622_v44  ;;  %v572_v3 = vld [vmem:[%s1352_s3] sm:$0xff]  ;;  %v611_v6 = vld [vmem:[#allocation6 + $0x8] sm:$0xff]  ;;  %v610_v7 = vld [vmem:[#allocation6] sm:$0xff] }
  0xff   : > { %594 = vmatpush.msra.mxu0 %v582_v42  ;;  %v588_v8 = vld [vmem:[%s1353_s4] sm:$0x1] }
 0x100   : > { %631 = vmatpush.msra.mxu1 %v621_v46  ;;  %v568_v53 = vrot.slane %v567_v48, 2  ;;  %v626_v12 = vld [vmem:[%s1355_s6] sm:$0x1] }
 0x101   : > { %595 = vmatpush.msra.mxu0 %v581_v45 }
 0x102   : > { %632 = vmatpush.msra.mxu1 %v620_v49  ;;  %v569_v58 = vmax.f32 %v567_v48, %v568_v53 }
 0x103   : > { %596 = vmatpush.msra.mxu0 %v580_v47 }
 0x104   : > { %633 = vmatpush.msra.mxu1 %v619_v51  ;;  %v570_v63 = vrot.slane %v569_v58, 1 }
 0x105   : > { %597 = vmatpush.msra.mxu0 %v579_v50 }
 0x106   : > { %634 = vmatpush.msra.mxu1 %v618_v54  ;;  %v571_v4 = vmax.f32 %v569_v58, %v570_v63 }
 0x107   : > { %598 = vmatpush.msra.mxu0 %v578_v52 }
 0x108   : > { %635 = vmatpush.msra.mxu1 %v617_v56 }
 0x109   : > { %599 = vmatpush.msra.mxu0 %v577_v55 }
 0x10a   : > { %636 = vmatpush.msra.mxu1 %v616_v59 }
 0x10b   : > { %600 = vmatpush.msra.mxu0 %v576_v57 }
 0x10c   : > { %637 = vmatpush.msra.mxu1 %v615_v61 }
 0x10d   : > { %601 = vmatpush.msra.mxu0 %v575_v60 }
 0x10e   : > { %638 = vmatpush.msra.mxu1 %v614_v0 }
 0x10f   : > { %602 = vmatpush.msra.mxu0 %v574_v62 }
 0x110   : > { %639 = vmatpush.msra.mxu1 %v613_v2 }
 0x111   : > { %603 = vmatpush.msra.mxu0 %v573_v1 }
 0x112   : > { %640 = vmatpush.msra.mxu1 %v612_v5 }
 0x113   : > { %604 = vmatpush.msra.mxu0 %v572_v3 }
 0x114   : > { %605 = vmatmul.f32.vlgmr.msra.gmra.mxu0 %v571_v4  ;;  %641 = vmatpush.msra.mxu1 %v611_v6 }
 0x116   : > { %642 = vmatpush.msra.mxu1 %v610_v7 }
 0x191   : > { %v606_v9 = vpop.f32.mrf.mxu0 }
 0x192   : > { %v607_v10 = vadd.f32 %v606_v9, %v588_v8 }
 0x194   : > { %v609_v11 = vmax.f32 %v607_v10, 0.0 }
 0x196   : > { %643 = vmatmul.f32.vlgmr.msra.gmra.mxu1 %v609_v11 }
 0x213   : > { %v644_v13 = vpop.f32.mrf.mxu1 }
 0x214   : > { %v645_v14 = vadd.f32 %v644_v13, %v626_v12 }
 0x216   : > { %647 = vst [vmem:[%s1224_s18] sm:$0x1] %v645_v14 }
 0x217 PF: > { %s657_s19 = scalar_lea.hbm %s1356_s7, %s1055_s28  ;;  %s659_s20 = sshll.u32 %s1224_s18, 4  ;;  %s660_s20 = int_to_ptr.vmem [resolvable:$true] %s659_s20 }
 0x218   : > { %s661_s13 = sshll.u32 %s657_s19, 4  ;;  %s649_s30 = scalar_lea.sflag [#allocation5], %s338_s29  ;;  %s662_s13 = int_to_ptr.hbm [resolvable:$true] %s661_s13 }
 0x219   : > { %s979_s11 = sshra.s32 %s662_s13, 4  ;;  %s985_s23 = scalar_lea.hbm %s1356_s7, 2  ;;  %s980_s11 = int_to_ptr.hbm [resolvable:$true] %s979_s11 }
 0x21a   : > { %s981_s12 = scalar_lea.hbm %s980_s11, 1  ;;  %p986_p11 = scmp.lt.s32.totalorder %s980_s11, %s1356_s7 }
 0x21b   : > { %p982_p7 = scmp.ne.s32.totalorder %s980_s11, %s981_s12  ;;  %p987_p12 = scmp.lt.s32.totalorder %s985_s23, %s981_s12 }
 0x21d   : > { %p983_p8 = pnand %p982_p7, %p1166_p3  ;;  %p988_p13 = por %p987_p12, %p986_p11 }
 0x21f   : > { %p984_p10 = pneg %p983_p8 }
 0x221   : > { %p989_p0 = pnand %p988_p13, %p984_p10 }
 0x223   : > { %992 = shalt.err (!%p989_p0)
}
 0x224   : > { %800 = dma.vmem_to_hbm [thread:$0]  (%p1166_p3), %s660_s20, 16, %s662_s13, %s649_s30  }
 0x225 PF: > { %p817_p1 = scmp.ge.s32.totalorder %s1067_s8, 2  ;;  %s673_s28 = sand.u32 1, %s1039_s24  }
 0x226   : > { %s674_s29 = scalar_lea.sflag [#allocation5], %s673_s28 }
 0x227   : > { %p810_p2 = pnand %p817_p1, %p1176_p9 }
 0x229   : > { %p811_p4 = pneg %p810_p2 }
 0x22b   : > { %1034 = dma.done.wait (%p811_p4), %s674_s29, 16  }
 0x22c   : > { %1036 = vsyncadd (%p811_p4), %s674_s29, 4294967280  ;;  %s22_s8 = sadd.s32 1, %s1067_s8   ;;  %s1368_s27 = sld [smem:[#allocation12_spill]] }
 0x22d   : > { %p19_p5 = scmp.ge.s32.totalorder %s22_s8, 6   ;;  %s1369_s28 = sld [smem:[#allocation13_spill]] }
 0x22e   : > { %s1370_s29 = sld [smem:[#allocation14_spill]]  ;;  %s1372_s24 = smov %s1043_s25 }
 0x22f   : > { %s1371_s30 = sld [smem:[#allocation15_spill]]  ;;  %s1373_s25 = smov %s1047_s26 }
 0x230   : > { %s1374_s26 = smov %s1196_s22  ;;  %21 = sbr.rel (!%p19_p5) target bundleno = 7 (0x7), region = 104 }
 0x235   :  { %679 = vsyncpa [#allocation4], 1 }
 0x236   :  { %681 = vsyncpa [#allocation4 + $0x1], 1 }
 0x237   :  { %682 = vsyncpa [#allocation7], 1 }
 0x238   :  { %683 = vsyncpa [#allocation5], 1 }
 0x239   :  { %685 = vsyncpa [#allocation5 + $0x1], 1 }

// kernel: tpu_custom_call.1
= control target key start
LH: loop header
LB: loop body
LE: loop exit
PB: predicated region body
PF: predicated region fallthrough
CT: control target
= control target key end

     0   :  { %12 = vsyncpa [#allocation4], 0  ;;  %s1349_s0 = inlined_call_operand.vmem [shape: f32[2,33,32], index: 0, kind: input, shape index: {}]   ;;  %s1350_s1 = inlined_call_operand.hbm [shape: f32[32,256], index: 1, kind: input, shape index: {}]   ;;  %s1351_s2 = inlined_call_operand.vmem [shape: f32[1,256], index: 2, kind: input, shape index: {}]   ;;  %s1352_s3 = inlined_call_operand.vmem [shape: f32[128,128], index: 3, kind: input, shape index: {}]   ;;  %s1353_s4 = inlined_call_operand.vmem [shape: f32[1,128], index: 4, kind: input, shape index: {}]   ;;  %s1354_s5 = inlined_call_operand.hbm [shape: f32[128,128], index: 5, kind: input, shape index: {}]   ;;  %s1355_s6 = inlined_call_operand.vmem [shape: f32[1,128], index: 6, kind: input, shape index: {}]   ;;  %s1356_s7 = inlined_call_operand.hbm [shape: f32[2,1,128], index: 7, kind: output, shape index: {}]  }
   0x1   :  { %13 = vsyncpa [#allocation7], 0 }
   0x2   :  { %14 = vsyncpa [#allocation5], 0 }
   0x3   :  { %16 = vsyncpa [#allocation5 + $0x1], 0  ;;  %s1116_s24 = smov 0   ;;  %s1118_s25 = smov 0  }
   0x4   :  { %s1120_s26 = smov 0   ;;  %s1122_s27 = smov 0  }
   0x5   :  { %s1124_s28 = smov 0   ;;  %s1126_s29 = smov 0  }
   0x6   :  { %s1128_s30 = smov 0   ;;  %s1130_s8 = smov 0  }
   0x7 LB: > { %1360 = sst [smem:[#allocation12_spill]] %s1059_s29  ;;  %s755_s9 = sadd.s32 4294967295, %s1067_s8   ;;  %s1067_s8 = sphi %s1130_s8, %s22_s8   ;;  %s1063_s30 = sphi %s1128_s30, %s1371_s30   ;;  %s1059_s29 = sphi %s1126_s29, %s1370_s29   ;;  %s1055_s28 = sphi %s1124_s28, %s1369_s28   ;;  %s1051_s27 = sphi %s1122_s27, %s1368_s27   ;;  %s1047_s26 = sphi %s1120_s26, %s1374_s26   ;;  %s1043_s25 = sphi %s1118_s25, %s1373_s25   ;;  %s1039_s24 = sphi %s1116_s24, %s1372_s24  }
   0x8   : > { %1361 = sst [smem:[#allocation13_spill]] %s1063_s30  ;;  %s756_s10 = sadd.s32 4294967294, %s1067_s8  }
   0x9   : > { %s31_s11 = sadd.s32 1, %s1059_s29  ;;  %s34_s12 = sadd.s32 1, %s1063_s30 }
   0xa   : > { %p32_p0 = scmp.ge.s32.totalorder %s31_s11, 2  ;;  %s195_s13 = sadd.s32 1, %s1047_s26 }
   0xb   : > { %p205_p1 = scmp.ne.s32.totalorder %s1047_s26, %s1043_s25  ;;  %p206_p2 = scmp.eq.s32.totalorder %s755_s9, 3 }
   0xc   : > { %s1376_s11 = smov (%p32_p0, %s31_s11), 0  ;;  %s1378_s12 = smov (!%p32_p0, %s34_s12), %s1063_s30 }
   0xd   : > { %1362 = sst [smem:[#allocation14_spill]] %s1376_s11  ;;  %p1166_p3 = por %p206_p2, %p205_p1 }
   0xe   : > { %p211_p4 = scmp.ne.s32.totalorder %s1043_s25, %s1039_s24  ;;  %p36_p5 = scmp.ge.s32.totalorder %s1378_s12, 2 }
   0xf   : > { %p212_p6 = scmp.eq.s32.totalorder %s756_s10, 3  ;;  %p757_p7 = scmp.ge.s32.totalorder %s1067_s8, 1 }
  0x10   : > { %p219_p8 = scmp.lt.s32.totalorder %s1067_s8, 5  ;;  %s1380_s12 = smov (%p36_p5, %s1378_s12), 0 }
  0x11   : > { %1364 = sst [smem:[#allocation15_spill]] %s1380_s12  ;;  %p1176_p9 = por %p212_p6, %p211_p4 }
  0x12   : > { %p1180_p10 = pnand %p757_p7, %p219_p8  ;;  %s192_s17 = ssub.s32 %s1063_s30, %s1380_s12 }
  0x13   : > { %p193_p11 = scmp.eq.s32.totalorder %s192_s17, 0  ;;  %p1188_p13 = scmp.eq.s32.totalorder %s755_s9, 0 }
  0x14   : > { %p802_p12 = pneg %p1180_p10  ;;  %s230_s21 = sshll.u32 %s1350_s1, 4  ;;  %s231_s21 = int_to_ptr.hbm [resolvable:$true] %s230_s21 }
  0x15   : > { %s1196_s22 = scalar_select %p193_p11, %s1047_s26, %s195_s13  }
  0x16   : > { %s1069_s23 = smov [#allocation3]   ;;  %p803_p0 = pnand %p1188_p13, %p802_p12 }
  0x17   : > { %s232_s10 = sshll.u32 %s1069_s23, 4  ;;  %s1070_s17 = smov 256   ;;  %s233_s10 = int_to_ptr.vmem [resolvable:$true] %s232_s10 }
  0x18   : > { %s1071_s12 = smov 16   ;;  %s253_s30 = sshll.u32 %s1354_s5, 4  ;;  %s254_s30 = int_to_ptr.hbm [resolvable:$true] %s253_s30 }
  0x19   : > { %805 = dma.hbm_to_vmem [thread:$0]  (!%p803_p0), %s231_s21, 1024, %s233_s10, [#allocation4], %s1070_s17, %s1070_s17, %s1071_s12  }
  0x1a   : > { %s1072_s29 = smov [#allocation6]   ;;  %s1073_s20 = smov 128  }
  0x1b   : > { %s255_s19 = sshll.u32 %s1072_s29, 4  ;;  %s1074_s13 = smov 8   ;;  %s256_s19 = int_to_ptr.vmem [resolvable:$true] %s255_s19 }
  0x1c   : > { %808 = dma.hbm_to_vmem [thread:$0]  (!%p803_p0), %s254_s30, 2048, %s256_s19, [#allocation7], %s1073_s20, %s1073_s20, %s1074_s13  }
  0x1d   : > { %295 = sbr.rel (%p1180_p10) target bundleno = 549 (0x225), region = 48 }
  0x22   : > { %1026 = dma.done.wait (%p1188_p13), [#allocation4], 1024  }
  0x23   : > { %1028 = vsyncadd (%p1188_p13), [#allocation4], 4294966272 }
  0x24   : > { %1030 = dma.done.wait (%p1188_p13), [#allocation7], 2048  }
  0x25   : > { %1032 = vsyncadd (%p1188_p13), [#allocation7], 4294965248  ;;  %s338_s29 = sand.u32 1, %s1043_s25   ;;  %s764_s30 = sshll.u32 %s1051_s27, 2 }
  0x26   : > { %p345_p1 = scmp.lt.s32.totalorder %s1055_s28, 1  ;;  %p347_p2 = scmp.lt.s32.totalorder %s764_s30, 4 }
  0x27   : > { %s1224_s18 = scalar_lea.vmem [#allocation8], %s338_s29  ;;  %p766_p4 = scmp.ne.s32.totalorder %s1051_s27, 0 }
  0x28   : > { %s346_s11 = scalar_select %p345_p1, %s1055_s28, 1 }
  0x29   : > { %s1382_s30 = smov (!%p347_p2, %s764_s30), 4 }
  0x2a   : > { %s791_s12 = smul.u32 5, %s346_s11 }
  0x2b   : > { %361 = sbr.rel (%p766_p4) target bundleno = 50 (0x32), region = 60 }
  0x2c   : > { %s350_s16 = sadd.s32 %s791_s12, %s1382_s30 }
  0x2d   : > { %s765_s21 = sshll.u32 %s350_s16, 3 }
  0x2e   : > { %s1220_s17 = scalar_lea.vmem %s1349_s0, %s765_s21 }
  0x30   : > { %v1075_v0 = vmov -inf  }
  0x31   : > { %362 = vst [vmem:[#allocation2] sm:$0xff] %v1075_v0 }
  0x32 PF: > { %v374_v1 = vld [vmem:[#allocation3 + $0x38] sm:$0xff]  ;;  %v372_v2 = vld [vmem:[#allocation3 + $0x28] sm:$0xff]  ;;  %v373_v4 = vld [vmem:[#allocation3 + $0x30] sm:$0xff]  ;;  %vm381_vm0 = vcmask 261120   ;;  %p779_p5 = scmp.eq.s32.totalorder %s1051_s27, 1 }
  0x33   : > { %435 = vmatpush.msra.mxu1 %v374_v1  ;;  %787 = vmatpush.msra.mxu3 %v374_v1  ;;  %v370_v3 = vld [vmem:[#allocation3 + $0x18] sm:$0xff]  ;;  %v371_v5 = vld [vmem:[#allocation3 + $0x20] sm:$0xff]  ;;  %v368_v6 = vld [vmem:[#allocation3 + $0x8] sm:$0xff] }
  0x34   : > { %406 = vmatpush.msra.mxu0 %v373_v4  ;;  %783 = vmatpush.msra.mxu2 %v373_v4  ;;  %v363_v7 = vld [vmem:[%s1220_s17] sm:$0xff]  ;;  %v365_v8 = vld [vmem:[%s1220_s17 + $0x10] sm:$0xff]  ;;  %v369_v9 = vld [vmem:[#allocation3 + $0x10] sm:$0xff] }
  0x35   : > { %436 = vmatpush.msra.mxu1 %v372_v2  ;;  %788 = vmatpush.msra.mxu3 %v372_v2  ;;  %v367_v10 = vld [vmem:[#allocation3] sm:$0xff]  ;;  %v366_v12 = vld [vmem:[%s1220_s17 + $0x18] sm:$0xff]  ;;  %v375_v13 = vld [vmem:[%s1351_s2] sm:$0x3] }
  0x36   : > { %407 = vmatpush.msra.mxu0 %v371_v5  ;;  %784 = vmatpush.msra.mxu2 %v371_v5  ;;  %v364_v11 = vld [vmem:[%s1220_s17 + $0x8] sm:$0xff]  ;;  %v378_v14 = vperm.slane %v375_v13, 1  ;;  %v377_v36 = vperm.slane %v375_v13, 0 }
  0x37   : > { %437 = vmatpush.msra.mxu1 %v370_v3  ;;  %789 = vmatpush.msra.mxu3 %v370_v3 }
  0x38   : > { %408 = vmatpush.msra.mxu0 %v369_v9  ;;  %785 = vmatpush.msra.mxu2 %v369_v9 }
  0x39   : > { %438 = vmatpush.msra.mxu1 %v368_v6  ;;  %790 = vmatpush.msra.mxu3 %v368_v6 }
  0x3a   : > { %771 = vmatmul.msk.f32.vlgmr.msra.gmra.mxu1 %vm381_vm0, %v363_v7  ;;  %773 = vmatmul.msk.f32.vlgmr.msra.gmra.mxu3 %vm381_vm0, %v365_v8 }
  0x3b   : > { %409 = vmatpush.msra.mxu0 %v367_v10  ;;  %786 = vmatpush.msra.mxu2 %v367_v10 }
  0x3c   : > { %767 = vmatmul.msk.f32.vlgmr.msra.gmra.mxu0 %vm381_vm0, %v363_v7  ;;  %769 = vmatmul.msk.f32.vlgmr.msra.gmra.mxu2 %vm381_vm0, %v365_v8 }
  0x42   : > { %772 = vmatmul.msk.f32.gmra.mxu1 %vm381_vm0, %v364_v11  ;;  %774 = vmatmul.msk.f32.gmra.mxu3 %vm381_vm0, %v366_v12 }
  0x44   : > { %768 = vmatmul.msk.f32.gmra.mxu0 %vm381_vm0, %v364_v11  ;;  %770 = vmatmul.msk.f32.gmra.mxu2 %vm381_vm0, %v366_v12 }
  0xb7   : > { %v440_v15 = vpop.f32.mrf.mxu1 }
  0xb8   : > { %v441_v16 = vadd.f32 %v440_v15, %v378_v14 }
  0xb9   : > { %v411_v34 = vpop.f32.mrf.mxu0 }
  0xba   : > { %v775_v17 = vmul.f32 -1.442695, %v441_v16  ;;  %v412_v44 = vadd.f32 %v411_v34, %v377_v36 }
  0xbc   : > { %889 = vpow2.f32 %v775_v17 }
  0xbd   : > { %v446_v18 = vpop.f32.mrf.mxu3 }
  0xbe   : > { %v447_v19 = vadd.f32 %v446_v18, %v378_v14 }
  0xbf   : > { %v443_v20 = vpop.f32.mrf.mxu1  ;;  %v417_v49 = vpop.f32.mrf.mxu2 }
  0xc0   : > { %v777_v21 = vmul.f32 -1.442695, %v447_v19  ;;  %v444_v22 = vadd.f32 %v443_v20, %v378_v14  ;;  %v418_v60 = vadd.f32 %v417_v49, %v377_v36 }
  0xc1   : > { %v414_v58 = vpop.f32.mrf.mxu0 }
  0xc2   : > { %v890_v23 = vpop.eup %889  ;;  %891 = vpow2.f32 %v777_v21  ;;  %v776_v24 = vmul.f32 -1.442695, %v444_v22  ;;  %v415_v3 = vadd.f32 %v414_v58, %v377_v36 }
  0xc3   : > { %v464_v25 = vadd.f32 1.0, %v890_v23 }
  0xc4   : > { %893 = vpow2.f32 %v776_v24 }
  0xc5   : > { %895 = vrcp.f32 %v464_v25  ;;  %v449_v26 = vpop.f32.mrf.mxu3  ;;  %v479_v38 = vand.u32 2147483648, %v464_v25  ;;  %vm473_vm1 = vweird.f32 %v464_v25  ;;  %v477_v41 = vand.u32 2147483647, %v464_v25 }
  0xc6   : > { %v450_v27 = vadd.f32 %v449_v26, %v378_v14 }
  0xc7   : > { %v480_v48 = vor.u32 1.1754944e-38, %v479_v38  ;;  %vm478_vm4 = vcmp.eq.f32.partialorder %v477_v41, 8.507059e+37  ;;  %v420_v13 = vpop.f32.mrf.mxu2 }
  0xc8   : > { %v892_v28 = vpop.eup %891  ;;  %v778_v29 = vmul.f32 -1.442695, %v450_v27  ;;  %v421_v18 = vadd.f32 %v420_v13, %v377_v36 }
  0xc9   : > { %v466_v30 = vadd.f32 1.0, %v892_v28 }
  0xca   : > { %v894_v31 = vpop.eup %893  ;;  %897 = vpow2.f32 %v778_v29 }
  0xcb   : > { %v896_v32 = vpop.eup %895  ;;  %899 = vrcp.f32 %v466_v30  ;;  %v465_v33 = vadd.f32 1.0, %v894_v31  ;;  %v507_v54 = vand.u32 2147483647, %v466_v30  ;;  %v509_v55 = vand.u32 2147483648, %v466_v30 }
  0xcc   : > { %v469_v35 = vmul.f32 %v896_v32, %v464_v25  ;;  %vm474_vm2 = vweird.f32 %v896_v32  ;;  %vm503_vm6 = vweird.f32 %v466_v30 }
  0xcd   : > { %901 = vrcp.f32 %v465_v33  ;;  %vm475_vm3 = vmor %vm473_vm1, %vm474_vm2  ;;  %vm488_vm7 = vweird.f32 %v465_v33  ;;  %v494_v61 = vand.u32 2147483648, %v465_v33  ;;  %v492_v0 = vand.u32 2147483647, %v465_v33 }
  0xce   : > { %v470_v37 = vsub.f32 1.0, %v469_v35  ;;  %v510_v2 = vor.u32 1.1754944e-38, %v509_v55  ;;  %vm508_vm10 = vcmp.eq.f32.partialorder %v507_v54, 8.507059e+37 }
  0xcf   : > { %v495_v8 = vor.u32 1.1754944e-38, %v494_v61  ;;  %vm493_vm12 = vcmp.eq.f32.partialorder %v492_v0, 8.507059e+37 }
  0xd0   : > { %v898_v39 = vpop.eup %897  ;;  %v471_v40 = vmul.f32 %v896_v32, %v470_v37 }
  0xd1   : > { %v900_v42 = vpop.eup %899  ;;  %v467_v43 = vadd.f32 1.0, %v898_v39 }
  0xd2   : > { %v472_v45 = vadd.f32 %v896_v32, %v471_v40  ;;  %v499_v46 = vmul.f32 %v900_v42, %v466_v30  ;;  %vm504_vm5 = vweird.f32 %v900_v42 }
  0xd3   : > { %v902_v47 = vpop.eup %901  ;;  %903 = vrcp.f32 %v467_v43  ;;  %vm505_vm9 = vmor %vm503_vm6, %vm504_vm5  ;;  %v524_v14 = vand.u32 2147483648, %v467_v43  ;;  %v522_v17 = vand.u32 2147483647, %v467_v43  ;;  %vm518_vm14 = vweird.f32 %v467_v43 }
  0xd4   : > { %v476_v50 = vsel %vm475_vm3, %v896_v32, %v472_v45  ;;  %v500_v51 = vsub.f32 1.0, %v499_v46  ;;  %v484_v52 = vmul.f32 %v902_v47, %v465_v33  ;;  %vm489_vm8 = vweird.f32 %v902_v47 }
  0xd5   : > { %v481_v53 = vsel %vm478_vm4, %v480_v48, %v476_v50  ;;  %vm490_vm11 = vmor %vm488_vm7, %vm489_vm8  ;;  %v525_v20 = vor.u32 1.1754944e-38, %v524_v14  ;;  %vm523_vm0 = vcmp.eq.f32.partialorder %v522_v17, 8.507059e+37 }
  0xd6   : > { %v1242_v56 = vmul.f32 %v481_v53, %v412_v44  ;;  %v501_v57 = vmul.f32 %v900_v42, %v500_v51  ;;  %v485_v59 = vsub.f32 1.0, %v484_v52 }
  0xd8   : > { %v502_v62 = vadd.f32 %v900_v42, %v501_v57  ;;  %v486_v63 = vmul.f32 %v902_v47, %v485_v59 }
  0xd9   : > { %v904_v1 = vpop.eup %903 }
  0xda   : > { %v506_v4 = vsel %vm505_vm9, %v900_v42, %v502_v62  ;;  %v487_v5 = vadd.f32 %v902_v47, %v486_v63  ;;  %v514_v6 = vmul.f32 %v904_v1, %v467_v43  ;;  %vm519_vm13 = vweird.f32 %v904_v1 }
  0xdb   : > { %v511_v7 = vsel %vm508_vm10, %v510_v2, %v506_v4  ;;  %vm520_vm15 = vmor %vm518_vm14, %vm519_vm13 }
  0xdc   : > { %v530_v9 = vmul.f32 %v511_v7, %v418_v60  ;;  %v491_v10 = vsel %vm490_vm11, %v902_v47, %v487_v5  ;;  %v515_v11 = vsub.f32 1.0, %v514_v6 }
  0xdd   : > { %v496_v12 = vsel %vm493_vm12, %v495_v8, %v491_v10 }
  0xde   : > { %v529_v15 = vmul.f32 %v496_v12, %v415_v3  ;;  %v516_v16 = vmul.f32 %v904_v1, %v515_v11 }
  0xe0   : > { %v517_v19 = vadd.f32 %v904_v1, %v516_v16  ;;  %535 = sbr.rel (%p779_p5) target bundleno = 237 (0xed), region = 64 }
  0xe2   : > { %v521_v21 = vsel %vm520_vm15, %v904_v1, %v517_v19 }
  0xe3   : > { %v526_v22 = vsel %vm523_vm0, %v525_v20, %v521_v21 }
  0xe4   : > { %v531_v23 = vmul.f32 %v526_v22, %v421_v18 }
  0xe5   : > { %v536_v24 = vmax.f32 %v1242_v56, %v529_v15  ;;  %v539_v26 = vld [vmem:[#allocation2] sm:$0xff] }
  0xe6   : > { %v537_v25 = vmax.f32 %v530_v9, %v531_v23 }
  0xe8   : > { %v538_v27 = vmax.f32 %v536_v24, %v537_v25 }
  0xea   : > { %v540_v28 = vmax.f32 %v539_v26, %v538_v27 }
  0xec   : > { %541 = vst [vmem:[#allocation2] sm:$0xff] %v540_v28 }
  0xed PF: > { %p780_p6 = scmp.ne.s32.totalorder %s1051_s27, 1 }
  0xef   : > { %545 = sbr.rel (%p780_p6) target bundleno = 535 (0x217), region = 68 }
  0xf4   : > { %v587_v29 = vld [vmem:[%s1352_s3 + $0x78] sm:$0xff]  ;;  %v586_v30 = vld [vmem:[%s1352_s3 + $0x70] sm:$0xff]  ;;  %v546_v31 = vlaneseq  ;;  %v585_v32 = vld [vmem:[%s1352_s3 + $0x68] sm:$0xff] }
  0xf5   : > { %589 = vmatpush.msra.mxu0 %v587_v29  ;;  %v584_v34 = vld [vmem:[%s1352_s3 + $0x60] sm:$0xff]  ;;  %v583_v38 = vld [vmem:[%s1352_s3 + $0x58] sm:$0xff]  ;;  %v623_v41 = vld [vmem:[#allocation6 + $0x68] sm:$0xff] }
  0xf6   : > { %v547_v33 = vshrl.u32 %v546_v31, 7  ;;  %v562_v36 = vld [vmem:[#allocation2] sm:$0xff]  ;;  %v624_v40 = vld [vmem:[#allocation6 + $0x70] sm:$0xff]  ;;  %v582_v42 = vld [vmem:[%s1352_s3 + $0x50] sm:$0xff] }
  0xf7   : > { %590 = vmatpush.msra.mxu0 %v586_v30  ;;  %v625_v37 = vld [vmem:[#allocation6 + $0x78] sm:$0xff]  ;;  %v622_v44 = vld [vmem:[#allocation6 + $0x60] sm:$0xff]  ;;  %v620_v49 = vld [vmem:[#allocation6 + $0x50] sm:$0xff] }
  0xf8   : > { %vm551_vm1 = vcmp.lt.s32.totalorder %v547_v33, 1  ;;  %627 = vmatpush.msra.mxu1 %v625_v37  ;;  %v581_v45 = vld [vmem:[%s1352_s3 + $0x48] sm:$0xff]  ;;  %v621_v46 = vld [vmem:[#allocation6 + $0x58] sm:$0xff]  ;;  %v579_v50 = vld [vmem:[%s1352_s3 + $0x38] sm:$0xff] }
  0xf9   : > { %591 = vmatpush.msra.mxu0 %v585_v32  ;;  %v555_v35 = vsel %vm551_vm1, %v1242_v56, -inf  ;;  %v580_v47 = vld [vmem:[%s1352_s3 + $0x40] sm:$0xff]  ;;  %v619_v51 = vld [vmem:[#allocation6 + $0x48] sm:$0xff]  ;;  %v618_v54 = vld [vmem:[#allocation6 + $0x40] sm:$0xff] }
  0xfa   : > { %v563_v39 = vmax.f32 %v562_v36, %v555_v35  ;;  %628 = vmatpush.msra.mxu1 %v624_v40  ;;  %v578_v52 = vld [vmem:[%s1352_s3 + $0x30] sm:$0xff]  ;;  %v577_v55 = vld [vmem:[%s1352_s3 + $0x28] sm:$0xff]  ;;  %v617_v56 = vld [vmem:[#allocation6 + $0x38] sm:$0xff] }
  0xfb   : > { %592 = vmatpush.msra.mxu0 %v584_v34  ;;  %v576_v57 = vld [vmem:[%s1352_s3 + $0x20] sm:$0xff]  ;;  %v616_v59 = vld [vmem:[#allocation6 + $0x30] sm:$0xff]  ;;  %v615_v61 = vld [vmem:[#allocation6 + $0x28] sm:$0xff] }
  0xfc   : > { %564 = vst [vmem:[#allocation2] sm:$0xff] %v563_v39  ;;  %v566_v43 = vrot.slane %v563_v39, 4  ;;  %629 = vmatpush.msra.mxu1 %v623_v41  ;;  %v575_v60 = vld [vmem:[%s1352_s3 + $0x18] sm:$0xff]  ;;  %v574_v62 = vld [vmem:[%s1352_s3 + $0x10] sm:$0xff]  ;;  %v614_v0 = vld [vmem:[#allocation6 + $0x20] sm:$0xff] }
  0xfd   : > { %593 = vmatpush.msra.mxu0 %v583_v38  ;;  %v573_v1 = vld [vmem:[%s1352_s3 + $0x8] sm:$0xff]  ;;  %v613_v2 = vld [vmem:[#allocation6 + $0x18] sm:$0xff]  ;;  %v612_v5 = vld [vmem:[#allocation6 + $0x10] sm:$0xff] }
  0xfe   : > { %v567_v48 = vmax.f32 %v563_v39, %v566_v43  ;;  %630 = vmatpush.msra.mxu1 %v622_v44  ;;  %v572_v3 = vld [vmem:[%s1352_s3] sm:$0xff]  ;;  %v611_v6 = vld [vmem:[#allocation6 + $0x8] sm:$0xff]  ;;  %v610_v7 = vld [vmem:[#allocation6] sm:$0xff] }
  0xff   : > { %594 = vmatpush.msra.mxu0 %v582_v42  ;;  %v588_v8 = vld [vmem:[%s1353_s4] sm:$0x1] }
 0x100   : > { %631 = vmatpush.msra.mxu1 %v621_v46  ;;  %v568_v53 = vrot.slane %v567_v48, 2  ;;  %v626_v12 = vld [vmem:[%s1355_s6] sm:$0x1] }
 0x101   : > { %595 = vmatpush.msra.mxu0 %v581_v45 }
 0x102   : > { %632 = vmatpush.msra.mxu1 %v620_v49  ;;  %v569_v58 = vmax.f32 %v567_v48, %v568_v53 }
 0x103   : > { %596 = vmatpush.msra.mxu0 %v580_v47 }
 0x104   : > { %633 = vmatpush.msra.mxu1 %v619_v51  ;;  %v570_v63 = vrot.slane %v569_v58, 1 }
 0x105   : > { %597 = vmatpush.msra.mxu0 %v579_v50 }
 0x106   : > { %634 = vmatpush.msra.mxu1 %v618_v54  ;;  %v571_v4 = vmax.f32 %v569_v58, %v570_v63 }
 0x107   : > { %598 = vmatpush.msra.mxu0 %v578_v52 }
 0x108   : > { %635 = vmatpush.msra.mxu1 %v617_v56 }
 0x109   : > { %599 = vmatpush.msra.mxu0 %v577_v55 }
 0x10a   : > { %636 = vmatpush.msra.mxu1 %v616_v59 }
 0x10b   : > { %600 = vmatpush.msra.mxu0 %v576_v57 }
 0x10c   : > { %637 = vmatpush.msra.mxu1 %v615_v61 }
 0x10d   : > { %601 = vmatpush.msra.mxu0 %v575_v60 }
 0x10e   : > { %638 = vmatpush.msra.mxu1 %v614_v0 }
 0x10f   : > { %602 = vmatpush.msra.mxu0 %v574_v62 }
 0x110   : > { %639 = vmatpush.msra.mxu1 %v613_v2 }
 0x111   : > { %603 = vmatpush.msra.mxu0 %v573_v1 }
 0x112   : > { %640 = vmatpush.msra.mxu1 %v612_v5 }
 0x113   : > { %604 = vmatpush.msra.mxu0 %v572_v3 }
 0x114   : > { %605 = vmatmul.f32.vlgmr.msra.gmra.mxu0 %v571_v4  ;;  %641 = vmatpush.msra.mxu1 %v611_v6 }
 0x116   : > { %642 = vmatpush.msra.mxu1 %v610_v7 }
 0x191   : > { %v606_v9 = vpop.f32.mrf.mxu0 }
 0x192   : > { %v607_v10 = vadd.f32 %v606_v9, %v588_v8 }
 0x194   : > { %v609_v11 = vmax.f32 %v607_v10, 0.0 }
 0x196   : > { %643 = vmatmul.f32.vlgmr.msra.gmra.mxu1 %v609_v11 }
 0x213   : > { %v644_v13 = vpop.f32.mrf.mxu1 }
 0x214   : > { %v645_v14 = vadd.f32 %v644_v13, %v626_v12 }
 0x216   : > { %647 = vst [vmem:[%s1224_s18] sm:$0x1] %v645_v14 }
 0x217 PF: > { %s657_s19 = scalar_lea.hbm %s1356_s7, %s1055_s28  ;;  %s659_s20 = sshll.u32 %s1224_s18, 4  ;;  %s660_s20 = int_to_ptr.vmem [resolvable:$true] %s659_s20 }
 0x218   : > { %s661_s13 = sshll.u32 %s657_s19, 4  ;;  %s649_s30 = scalar_lea.sflag [#allocation5], %s338_s29  ;;  %s662_s13 = int_to_ptr.hbm [resolvable:$true] %s661_s13 }
 0x219   : > { %s979_s11 = sshra.s32 %s662_s13, 4  ;;  %s985_s23 = scalar_lea.hbm %s1356_s7, 2  ;;  %s980_s11 = int_to_ptr.hbm [resolvable:$true] %s979_s11 }
 0x21a   : > { %s981_s12 = scalar_lea.hbm %s980_s11, 1  ;;  %p986_p11 = scmp.lt.s32.totalorder %s980_s11, %s1356_s7 }
 0x21b   : > { %p982_p7 = scmp.ne.s32.totalorder %s980_s11, %s981_s12  ;;  %p987_p12 = scmp.lt.s32.totalorder %s985_s23, %s981_s12 }
 0x21d   : > { %p983_p8 = pnand %p982_p7, %p1166_p3  ;;  %p988_p13 = por %p987_p12, %p986_p11 }
 0x21f   : > { %p984_p10 = pneg %p983_p8 }
 0x221   : > { %p989_p0 = pnand %p988_p13, %p984_p10 }
 0x223   : > { %992 = shalt.err (!%p989_p0)
}
 0x224   : > { %800 = dma.vmem_to_hbm [thread:$0]  (%p1166_p3), %s660_s20, 16, %s662_s13, %s649_s30  }
 0x225 PF: > { %p817_p1 = scmp.ge.s32.totalorder %s1067_s8, 2  ;;  %s673_s28 = sand.u32 1, %s1039_s24  }
 0x226   : > { %s674_s29 = scalar_lea.sflag [#allocation5], %s673_s28 }
 0x227   : > { %p810_p2 = pnand %p817_p1, %p1176_p9 }
 0x229   : > { %p811_p4 = pneg %p810_p2 }
 0x22b   : > { %1034 = dma.done.wait (%p811_p4), %s674_s29, 16  }
 0x22c   : > { %1036 = vsyncadd (%p811_p4), %s674_s29, 4294967280  ;;  %s22_s8 = sadd.s32 1, %s1067_s8   ;;  %s1368_s27 = sld [smem:[#allocation12_spill]] }
 0x22d   : > { %p19_p5 = scmp.ge.s32.totalorder %s22_s8, 6   ;;  %s1369_s28 = sld [smem:[#allocation13_spill]] }
 0x22e   : > { %s1370_s29 = sld [smem:[#allocation14_spill]]  ;;  %s1372_s24 = smov %s1043_s25 }
 0x22f   : > { %s1371_s30 = sld [smem:[#allocation15_spill]]  ;;  %s1373_s25 = smov %s1047_s26 }
 0x230   : > { %s1374_s26 = smov %s1196_s22  ;;  %21 = sbr.rel (!%p19_p5) target bundleno = 7 (0x7), region = 104 }
 0x235   :  { %679 = vsyncpa [#allocation4], 1 }
 0x236   :  { %681 = vsyncpa [#allocation4 + $0x1], 1 }
 0x237   :  { %682 = vsyncpa [#allocation7], 1 }
 0x238   :  { %683 = vsyncpa [#allocation5], 1 }
 0x239   :  { %685 = vsyncpa [#allocation5 + $0x1], 1 }

</bundles_post_ra>
